<compile_context>
chip_gen: v7x
topology: tpu7x:2x2x1
jax: 0.10.0
libtpu: 0.0.40
codegen_flags: <defaults>
</compile_context>

<pallas_src>
import functools
import math

import jax
import jax.numpy as jnp
from jax.experimental import pallas as pl
from jax.experimental.pallas import tpu as pltpu


_UNROLL_MAX_LAYERS = 4  # static unroll up to this depth; deeper nets use lax.fori_loop


# -----------------------------------------------------------------------------
# Fused kernel: one (batch, row-tile) block computes the entire MFN forward.
# -----------------------------------------------------------------------------
def _mfn_kernel(x_ref, wf_ref, bT_ref, bias_ref, phase_ref, wout_ref, bout_ref,
                o_ref, *, n_layers, compute_dtype):
    """Ref shapes per grid step (hp = hidden padded to a multiple of 128):
      x_ref    : (TM, in_size)           spatial-coordinate row tile
      wf_ref   : (L, in_size, hp)        Fourier weights: transposed, weight_scale folded,
                                         duplicated (sin half | cos half), zero-padded, f32
      bT_ref   : (max(nl,1), hp, hp)     bilinear B_i^T for layers i>=1 (compute dtype)
      bias_ref : (L, 1, hp)              per-batch  code @ A_i^T + bias_i   (f32)
      phase_ref: (1, hp)                 0 / pi/2 phase implementing cos = sin(.+pi/2)
      wout_ref : (out_size, hp)          output linear weight, torch layout (compute dtype)
      bout_ref : (out_size, 1)           output linear bias (f32)
      o_ref    : (out_size, TM)          lane-dense transposed output tile (f32)
    """
    f32 = jnp.float32
    cdt = compute_dtype
    n_filters = n_layers + 1

    x = x_ref[...].astype(f32)                        # (TM, in)
    tm = x.shape[0]
    hp = phase_ref.shape[-1]

    # Hoisted once per grid step (JAX does not CSE broadcast_in_dim).
    phase_b = jnp.broadcast_to(phase_ref[...], (tm, hp))

    def fourier(wf_i):
        # cos(z) == sin(z + pi/2): duplicated filter weight + phase vector give
        # [sin(lf) | cos(lf)] from one lane-dense MXU matmul and one EUP sin pass.
        lf = jnp.dot(x, wf_i, preferred_element_type=f32)
        return jnp.sin(lf + phase_b)                  # (TM, hp) f32

    if n_layers <= _UNROLL_MAX_LAYERS:
        # Filters are independent of the bilinear chain: computing them up front lets
        # the scheduler run layer i+1's EUP sin under layer i's MXU bilinear.
        filt = [fourier(wf_ref[i]) for i in range(n_filters)]
        out = filt[0] * bias_ref[0]                   # layer 0: x*0 kills the B term
        for i in range(1, n_filters):
            bil = jnp.dot(out.astype(cdt), bT_ref[i - 1],
                          preferred_element_type=f32)
            out = filt[i] * (bil + bias_ref[i])
    else:
        # Deep nets: fori_loop bounds vreg live ranges per layer.
        out0 = fourier(wf_ref[0]) * bias_ref[0]

        def body(i, out):
            f_i = fourier(wf_ref[i])                  # dynamic leading-axis index
            bil = jnp.dot(out.astype(cdt), bT_ref[i - 1],
                          preferred_element_type=f32)
            return f_i * (bil + bias_ref[i])

        out = jax.lax.fori_loop(1, n_filters, body, out0)

    # output_bilinear, computed transposed -> (out_size, TM) so the store is lane-dense
    # even when out_size < 128 (no masked vst on a 1-lane-wide block).
    res_t = jax.lax.dot_general(wout_ref[...], out.astype(cdt),
                                (((1,), (1,)), ((), ())),
                                preferred_element_type=f32)       # (out_size, TM)
    o_ref[...] = (res_t + bout_ref[...]).astype(o_ref.dtype)


def _pad_last(a, target):
    pad = target - a.shape[-1]
    if pad == 0:
        return a
    cfg = [(0, 0)] * (a.ndim - 1) + [(0, pad)]
    return jnp.pad(a, cfg)


# -----------------------------------------------------------------------------
# Wrapper: parameter prep (tiny, one-time XLA glue) + pallas_call tiling.
# -----------------------------------------------------------------------------
def mfn_forward(x, code, params, *, weight_scale, tile_m=None,
                compute_dtype=jnp.bfloat16):
    """x: (B, T, H, W, in_size); code: (B, code_size). Returns (out, x) like the module.

    compute_dtype: operand dtype for the hidden x hidden bilinear and output matmuls
    (accumulation is always f32).  bf16 is the MXU-native fast path on v5e/v6e/v7x and
    halves weight VMEM/DMA; pass jnp.float32 for a bit-accurate fallback.
    """
    filt_w = params["filter_w"]          # (L, hidden//2, in_size)   torch layout
    A = params["A"]                      # (L, hidden, code_size)
    Bm = params["B"]                     # (n_layers, hidden, hidden)
    bias = params["bias"]                # (L, hidden)
    wout = params["wout"]                # (out_size, hidden)
    bout = params["bout"]                # (out_size,)

    L, half, in_size = filt_w.shape
    n_layers = L - 1
    hidden = 2 * half
    out_size = wout.shape[0]
    hp = ((hidden + 127) // 128) * 128   # pad hidden to a lane-tile multiple

    b, t, h, w, _ = x.shape
    thw = t * h * w
    x3d = x.reshape(b, thw, in_size)

    if code.ndim < 2:                    # matches the torch unsqueeze(-1) branch
        code = code[:, None]

    cdt = jnp.dtype(compute_dtype)
    f32 = jnp.float32

    # ---- tiny one-time parameter prep (outside the kernel) ------------------
    # weight_scale folded into the filter weights; sin|cos via weight duplication + phase.
    wf_t = jnp.transpose(filt_w, (0, 2, 1)).astype(f32) * float(weight_scale)
    wf = _pad_last(jnp.concatenate([wf_t, wf_t], axis=-1), hp)       # (L, in, hp) f32
    phase = jnp.concatenate([jnp.zeros((half,), f32),
                             jnp.full((half,), math.pi / 2.0, f32),
                             jnp.zeros((hp - hidden,), f32)]).reshape(1, hp)

    if n_layers > 0:
        bT = jnp.transpose(Bm, (0, 2, 1)).astype(f32)                # (nl, hid, hid)
        bT = _pad_last(jnp.pad(bT, ((0, 0), (0, hp - hidden), (0, 0))), hp).astype(cdt)
    else:
        bT = jnp.zeros((1, 8, 128), cdt)                             # tiny unused dummy

    # per-batch code bias:  code @ A_i^T + bias_i  -> (B, L, 1, hp)   (f32 post-matmul add)
    A_p = jnp.pad(A.astype(f32), ((0, 0), (0, hp - hidden), (0, 0)))
    bias_full = (jnp.einsum("bj,loj->blo", code.astype(f32), A_p)
                 + _pad_last(bias.astype(f32), hp)[None])
    bias_full = bias_full.reshape(b, L, 1, hp)
    wout_p = _pad_last(wout.astype(f32), hp).astype(cdt)             # (out, hp)
    bout2 = bout.reshape(out_size, 1).astype(f32)

    # ---- generation-aware VMEM limit & row tiling ----------------------------
    try:
        vmem_cap = int(pltpu.get_tpu_info().vmem_capacity_bytes)
    except Exception:
        vmem_cap = 128 * 1024 * 1024
    vmem_limit = max(32 * 1024 * 1024,
                     min(100 * 1024 * 1024, (vmem_cap * 3) // 4))

    # Resident weights are double-buffered by the pipeline; per-row live f32 working set
    # ~ (L filters + out + bil + lf + slack) * hp plus the (double-buffered) x/out tiles.
    w_bytes = (wf.size * 4 + (bT.size + wout_p.size) * cdt.itemsize
               + (L * hp + hp + out_size) * 4)
    per_row = 4 * (L + 4) * hp + 8 * (in_size + out_size) + 64
    if tile_m is None:
        tile_m = int(max(128, min(2048, (vmem_limit - 2 * w_bytes) // per_row)))
    tile_m = max(128, (int(tile_m) // 128) * 128)    # lane-dense output tiles
    tm = thw if thw <= tile_m else tile_m
    grid_m = pl.cdiv(thw, tm)

    kernel = functools.partial(_mfn_kernel, n_layers=n_layers, compute_dtype=cdt)

    # advisory cost estimate: matmul flops + sin transcendentals + HBM bytes
    rows = b * thw
    flops = rows * (L * 2 * in_size * hp + n_layers * 2 * hp * hp
                    + 2 * hp * out_size + (3 * L + 2 * n_layers) * hp)
    bytes_accessed = (x3d.size * x3d.dtype.itemsize + rows * out_size * 4
                      + wf.size * 4 + (bT.size + wout_p.size) * cdt.itemsize
                      + (bias_full.size + phase.size + bout2.size) * 4)

    out_t = pl.pallas_call(
        kernel,
        out_shape=jax.ShapeDtypeStruct((b, out_size, thw), f32),
        grid_spec=pltpu.PrefetchScalarGridSpec(
            num_scalar_prefetch=0,
            grid=(b, grid_m),
            in_specs=[
                # x row tile (batch dim squeezed out)
                pl.BlockSpec((None, tm, in_size), lambda bi, mi: (bi, mi, 0)),
                # weights: whole arrays, constant index_map -> DMA'd once, VMEM-resident
                pl.BlockSpec(wf.shape, lambda bi, mi: (0, 0, 0)),
                pl.BlockSpec(bT.shape, lambda bi, mi: (0, 0, 0)),
                # per-batch code bias
                pl.BlockSpec((None, L, 1, hp), lambda bi, mi: (bi, 0, 0, 0)),
                pl.BlockSpec(phase.shape, lambda bi, mi: (0, 0)),
                pl.BlockSpec(wout_p.shape, lambda bi, mi: (0, 0)),
                pl.BlockSpec(bout2.shape, lambda bi, mi: (0, 0)),
            ],
            # lane-dense transposed output: TM rides the 128-lane axis even for out_size=1.
            out_specs=pl.BlockSpec((None, out_size, tm), lambda bi, mi: (bi, 0, mi)),
        ),
        compiler_params=pltpu.CompilerParams(
            dimension_semantics=("parallel", "parallel"),   # megacore-shardable on v7x
            vmem_limit_bytes=int(vmem_limit),
        ),
        cost_estimate=pl.CostEstimate(
            flops=int(flops),
            transcendentals=int(rows * L * hp),
            bytes_accessed=int(bytes_accessed),
        ),
    )(x3d, wf, bT, bias_full, phase, wout_p, bout2)

    out = jnp.transpose(out_t, (0, 2, 1)).reshape(b, t, h, w, out_size)
    if out_size == 1:
        out = out[..., 0]
    return out, x


# -----------------------------------------------------------------------------
# Plain-JAX reference (mirrors the PyTorch module exactly, uses real cos).
# -----------------------------------------------------------------------------
def mfn_reference(x, code, params, *, weight_scale):
    filt_w = params["filter_w"]
    A, Bm = params["A"], params["B"]
    bias, wout, bout = params["bias"], params["wout"], params["bout"]
    L = filt_w.shape[0]
    n_layers = L - 1
    if code.ndim < 2:
        code = code[:, None]

    def fourier(i):
        lf = jnp.einsum("bthwi,oi->bthwo", x, filt_w[i] * weight_scale)
        return jnp.concatenate([jnp.sin(lf), jnp.cos(lf)], axis=-1)

    def code_bias(i):
        bc = jnp.einsum("bj,oj->bo", code, A[i]) + bias[i]
        return bc[:, None, None, None, :]

    out = fourier(0) * code_bias(0)
    for i in range(1, n_layers + 1):
        bil = jnp.einsum("bthwk,ok->bthwo", out, Bm[i - 1]) + code_bias(i)
        out = fourier(i) * bil
    out = jnp.einsum("bthwk,ok->bthwo", out, wout) + bout
    if out.shape[-1] == 1:
        out = out[..., 0]
    return out, x


if __name__ == "__main__":
    def make_params(key, L, half, in_size, code_size, hidden, out_size, n_layers):
        ks = jax.random.split(key, 6)

        def uniform(k, shape, bound):
            return jax.random.uniform(k, shape, jnp.float32, -bound, bound)

        # kaiming_uniform_(a=sqrt(5)) on (fan_out, fan_in) <=> U(+-1/sqrt(fan_in))
        return {
            "filter_w": uniform(ks[0], (L, half, in_size), 1.0 / math.sqrt(in_size)),
            "A":        uniform(ks[1], (L, hidden, code_size), 1.0 / math.sqrt(code_size)),
            "B":        uniform(ks[2], (n_layers, hidden, hidden), 1.0 / math.sqrt(hidden)),
            "bias":     uniform(ks[3], (L, hidden), 1.0 / math.sqrt(hidden)),
            "wout":     uniform(ks[4], (out_size, hidden), 1.0 / math.sqrt(hidden)),
            "bout":     uniform(ks[5], (out_size,), 1.0 / math.sqrt(hidden)),
        }

    key = jax.random.PRNGKey(0)
    kA, kB, kx, kc, kx2, kc2 = jax.random.split(key, 6)

    # --- config A: module-scale shapes, static-unroll path, hidden padded 32 -> 128 ---
    b, t, h, w = 2, 2, 4, 4
    in_size, code_size, hidden, out_size, n_layers = 8, 4, 32, 1, 2
    weight_scale = 3.0
    L, half = n_layers + 1, hidden // 2
    params = make_params(kA, L, half, in_size, code_size, hidden, out_size, n_layers)
    x = jax.random.normal(kx, (b, t, h, w, in_size), jnp.float32)
    code = jax.random.normal(kc, (b, code_size), jnp.float32)

    ref_out, _ = mfn_reference(x, code, params, weight_scale=weight_scale)

    # exact-math path (f32 matmul operands)
    out32, x_ret = mfn_forward(x, code, params, weight_scale=weight_scale,
                               compute_dtype=jnp.float32)
    out32 = jax.block_until_ready(out32)
    assert out32.shape == ref_out.shape == (b, t, h, w)
    err32 = float(jnp.max(jnp.abs(out32 - ref_out)))
    assert jnp.allclose(out32, ref_out, atol=1e-4, rtol=1e-4), f"f32 max|err|={err32}"
    assert jnp.array_equal(x_ret, x)

    # fast path (bf16 matmul operands, f32 accumulation) -- looser tolerance
    outbf, _ = mfn_forward(x, code, params, weight_scale=weight_scale)   # default bf16
    outbf = jax.block_until_ready(outbf)
    errbf = float(jnp.max(jnp.abs(outbf - ref_out)))
    assert jnp.allclose(outbf, ref_out, atol=5e-2, rtol=5e-2), f"bf16 max|err|={errbf}"

    # --- config B: deep net (fori_loop path), tiled rows with a partial last tile,
    #     non-128 hidden (48 -> 128), out_size=2 (no squeeze) ---------------------------
    b2, t2, h2, w2 = 1, 2, 10, 10            # thw = 200 -> two 128-row tiles, last partial
    in2, code2, hid2, out2, nl2 = 3, 6, 48, 2, 5
    ws2 = 2.0
    L2, half2 = nl2 + 1, hid2 // 2
    params2 = make_params(kB, L2, half2, in2, code2, hid2, out2, nl2)
    x2 = jax.random.normal(kx2, (b2, t2, h2, w2, in2), jnp.float32)
    code_2 = jax.random.normal(kc2, (b2, code2), jnp.float32)

    ref2, _ = mfn_reference(x2, code_2, params2, weight_scale=ws2)
    res2, _ = mfn_forward(x2, code_2, params2, weight_scale=ws2,
                          tile_m=128, compute_dtype=jnp.float32)
    res2 = jax.block_until_ready(res2)
    assert res2.shape == ref2.shape == (b2, t2, h2, w2, out2)
    err2 = float(jnp.max(jnp.abs(res2 - ref2)))
    assert jnp.allclose(res2, ref2, atol=2e-3, rtol=2e-3), f"cfgB max|err|={err2}"

    print("KERNEL_OK")
</pallas_src>

<mosaic_0001>
module attributes {stable_mosaic.version = 11 : i64} {
  func.func @_mfn_kernel(%arg0: i32, %arg1: i32, %arg2: memref<1x32x8xf32, #tpu.memory_space<vmem>>, %arg3: memref<3x8x128xf32, #tpu.memory_space<vmem>>, %arg4: memref<2x128x128xf32, #tpu.memory_space<vmem>>, %arg5: memref<1x3x1x128xf32, #tpu.memory_space<vmem>>, %arg6: memref<1x128xf32, #tpu.memory_space<vmem>>, %arg7: memref<1x128xf32, #tpu.memory_space<vmem>>, %arg8: memref<1x1xf32, #tpu.memory_space<vmem>>, %arg9: memref<1x1x32xf32, #tpu.memory_space<vmem>>) attributes {dimension_semantics = [#tpu.dimension_semantics<parallel>, #tpu.dimension_semantics<parallel>], iteration_bounds = array<i64: 2, 1>, scalar_prefetch = 0 : i64, scratch_operands = 0 : i64, tpu.core_type = #tpu.core_type<tc>, window_params = [{transform_indices = @transform_0, window_bounds = array<i64: 1, 32, 8>}, {pipeline_mode = #tpu.pipeline_mode<synchronous>, transform_indices = @transform_1, window_bounds = array<i64: 3, 8, 128>}, {pipeline_mode = #tpu.pipeline_mode<synchronous>, transform_indices = @transform_2, window_bounds = array<i64: 2, 128, 128>}, {transform_indices = @transform_3, window_bounds = array<i64: 1, 3, 1, 128>}, {pipeline_mode = #tpu.pipeline_mode<synchronous>, transform_indices = @transform_4, window_bounds = array<i64: 1, 128>}, {pipeline_mode = #tpu.pipeline_mode<synchronous>, transform_indices = @transform_5, window_bounds = array<i64: 1, 128>}, {pipeline_mode = #tpu.pipeline_mode<synchronous>, transform_indices = @transform_6, window_bounds = array<i64: 1, 1>}, {transform_indices = @transform_7, window_bounds = array<i64: 1, 1, 32>}]} {
    %c0 = arith.constant 0 : index
    %c0_0 = arith.constant 0 : index
    %c0_1 = arith.constant 0 : index
    %0 = vector.load %arg2[%c0, %c0_0, %c0_1] : memref<1x32x8xf32, #tpu.memory_space<vmem>>, vector<1x32x8xf32>
    %1 = vector.shape_cast %0 : vector<1x32x8xf32> to vector<32x8xf32>
    %c0_2 = arith.constant 0 : index
    %c0_3 = arith.constant 0 : index
    %2 = vector.load %arg6[%c0_2, %c0_3] : memref<1x128xf32, #tpu.memory_space<vmem>>, vector<1x128xf32>
    %3 = vector.shape_cast %2 : vector<1x128xf32> to vector<1x128xf32>
    %4 = vector.broadcast %3 : vector<1x128xf32> to vector<32x128xf32>
    %c0_4 = arith.constant 0 : index
    %c0_5 = arith.constant 0 : index
    %c0_6 = arith.constant 0 : index
    %5 = vector.load %arg3[%c0_4, %c0_5, %c0_6] : memref<3x8x128xf32, #tpu.memory_space<vmem>>, vector<1x8x128xf32>
    %6 = vector.shape_cast %5 : vector<1x8x128xf32> to vector<8x128xf32>
    %cst = arith.constant dense<0.000000e+00> : vector<32x128xf32>
    %7 = tpu.matmul %1, %6, %cst {dimension_numbers = #tpu.dot_dimension_numbers<[1], [0], [0], [1], [0, 0, 1, 1], [], []>} : vector<32x8xf32>, vector<8x128xf32>, vector<32x128xf32> -> vector<32x128xf32>
    %8 = arith.addf %7, %4 : vector<32x128xf32>
    %9 = math.sin %8 : vector<32x128xf32>
    %c1 = arith.constant 1 : index
    %c0_7 = arith.constant 0 : index
    %c0_8 = arith.constant 0 : index
    %10 = vector.load %arg3[%c1, %c0_7, %c0_8] : memref<3x8x128xf32, #tpu.memory_space<vmem>>, vector<1x8x128xf32>
    %11 = vector.shape_cast %10 : vector<1x8x128xf32> to vector<8x128xf32>
    %cst_9 = arith.constant dense<0.000000e+00> : vector<32x128xf32>
    %12 = tpu.matmul %1, %11, %cst_9 {dimension_numbers = #tpu.dot_dimension_numbers<[1], [0], [0], [1], [0, 0, 1, 1], [], []>} : vector<32x8xf32>, vector<8x128xf32>, vector<32x128xf32> -> vector<32x128xf32>
    %13 = arith.addf %12, %4 : vector<32x128xf32>
    %14 = math.sin %13 : vector<32x128xf32>
    %c2 = arith.constant 2 : index
    %c0_10 = arith.constant 0 : index
    %c0_11 = arith.constant 0 : index
    %15 = vector.load %arg3[%c2, %c0_10, %c0_11] : memref<3x8x128xf32, #tpu.memory_space<vmem>>, vector<1x8x128xf32>
    %16 = vector.shape_cast %15 : vector<1x8x128xf32> to vector<8x128xf32>
    %cst_12 = arith.constant dense<0.000000e+00> : vector<32x128xf32>
    %17 = tpu.matmul %1, %16, %cst_12 {dimension_numbers = #tpu.dot_dimension_numbers<[1], [0], [0], [1], [0, 0, 1, 1], [], []>} : vector<32x8xf32>, vector<8x128xf32>, vector<32x128xf32> -> vector<32x128xf32>
    %18 = arith.addf %17, %4 : vector<32x128xf32>
    %19 = math.sin %18 : vector<32x128xf32>
    %c0_13 = arith.constant 0 : index
    %c0_14 = arith.constant 0 : index
    %c0_15 = arith.constant 0 : index
    %c0_16 = arith.constant 0 : index
    %20 = vector.load %arg5[%c0_13, %c0_14, %c0_15, %c0_16] : memref<1x3x1x128xf32, #tpu.memory_space<vmem>>, vector<1x1x1x128xf32>
    %21 = vector.shape_cast %20 : vector<1x1x1x128xf32> to vector<1x128xf32>
    %22 = vector.broadcast %21 : vector<1x128xf32> to vector<32x128xf32>
    %23 = arith.mulf %9, %22 : vector<32x128xf32>
    %c0_17 = arith.constant 0 : index
    %c0_18 = arith.constant 0 : index
    %c0_19 = arith.constant 0 : index
    %24 = vector.load %arg4[%c0_17, %c0_18, %c0_19] : memref<2x128x128xf32, #tpu.memory_space<vmem>>, vector<1x128x128xf32>
    %25 = vector.shape_cast %24 : vector<1x128x128xf32> to vector<128x128xf32>
    %cst_20 = arith.constant dense<0.000000e+00> : vector<32x128xf32>
    %26 = tpu.matmul %23, %25, %cst_20 {dimension_numbers = #tpu.dot_dimension_numbers<[1], [0], [0], [1], [0, 0, 1, 1], [], []>} : vector<32x128xf32>, vector<128x128xf32>, vector<32x128xf32> -> vector<32x128xf32>
    %c0_21 = arith.constant 0 : index
    %c1_22 = arith.constant 1 : index
    %c0_23 = arith.constant 0 : index
    %c0_24 = arith.constant 0 : index
    %27 = vector.load %arg5[%c0_21, %c1_22, %c0_23, %c0_24] : memref<1x3x1x128xf32, #tpu.memory_space<vmem>>, vector<1x1x1x128xf32>
    %28 = vector.shape_cast %27 : vector<1x1x1x128xf32> to vector<1x128xf32>
    %29 = vector.broadcast %28 : vector<1x128xf32> to vector<32x128xf32>
    %30 = arith.addf %26, %29 : vector<32x128xf32>
    %31 = arith.mulf %14, %30 : vector<32x128xf32>
    %c1_25 = arith.constant 1 : index
    %c0_26 = arith.constant 0 : index
    %c0_27 = arith.constant 0 : index
    %32 = vector.load %arg4[%c1_25, %c0_26, %c0_27] : memref<2x128x128xf32, #tpu.memory_space<vmem>>, vector<1x128x128xf32>
    %33 = vector.shape_cast %32 : vector<1x128x128xf32> to vector<128x128xf32>
    %cst_28 = arith.constant dense<0.000000e+00> : vector<32x128xf32>
    %34 = tpu.matmul %31, %33, %cst_28 {dimension_numbers = #tpu.dot_dimension_numbers<[1], [0], [0], [1], [0, 0, 1, 1], [], []>} : vector<32x128xf32>, vector<128x128xf32>, vector<32x128xf32> -> vector<32x128xf32>
    %c0_29 = arith.constant 0 : index
    %c2_30 = arith.constant 2 : index
    %c0_31 = arith.constant 0 : index
    %c0_32 = arith.constant 0 : index
    %35 = vector.load %arg5[%c0_29, %c2_30, %c0_31, %c0_32] : memref<1x3x1x128xf32, #tpu.memory_space<vmem>>, vector<1x1x1x128xf32>
    %36 = vector.shape_cast %35 : vector<1x1x1x128xf32> to vector<1x128xf32>
    %37 = vector.broadcast %36 : vector<1x128xf32> to vector<32x128xf32>
    %38 = arith.addf %34, %37 : vector<32x128xf32>
    %39 = arith.mulf %19, %38 : vector<32x128xf32>
    %c0_33 = arith.constant 0 : index
    %c0_34 = arith.constant 0 : index
    %40 = vector.load %arg7[%c0_33, %c0_34] : memref<1x128xf32, #tpu.memory_space<vmem>>, vector<1x128xf32>
    %cst_35 = arith.constant dense<0.000000e+00> : vector<1x32xf32>
    %41 = tpu.matmul %40, %39, %cst_35 {dimension_numbers = #tpu.dot_dimension_numbers<[1], [1], [0], [0], [0, 0, 1, 0], [], []>} : vector<1x128xf32>, vector<32x128xf32>, vector<1x32xf32> -> vector<1x32xf32>
    %c0_36 = arith.constant 0 : index
    %c0_37 = arith.constant 0 : index
    %42 = vector.load %arg8[%c0_36, %c0_37] : memref<1x1xf32, #tpu.memory_space<vmem>>, vector<1x1xf32>
    %43 = vector.broadcast %42 : vector<1x1xf32> to vector<1x32xf32>
    %44 = arith.addf %41, %43 : vector<1x32xf32>
    %c0_38 = arith.constant 0 : index
    %c0_39 = arith.constant 0 : index
    %c0_40 = arith.constant 0 : index
    %45 = vector.load %arg9[%c0_38, %c0_39, %c0_40] : memref<1x1x32xf32, #tpu.memory_space<vmem>>, vector<1x1x32xf32>
    %46 = vector.shape_cast %45 : vector<1x1x32xf32> to vector<1x32xf32>
    %47 = vector.shape_cast %44 : vector<1x32xf32> to vector<1x1x32xf32>
    tpu.vector_store %arg9[%c0_38, %c0_39, %c0_40], %47 {strides = array<i32>} : memref<1x1x32xf32, #tpu.memory_space<vmem>>, vector<1x1x32xf32>,
    return
  }
  func.func @transform_0(%arg0: i32, %arg1: i32) -> (i32, i32, i32) {
    %c0_i32 = arith.constant 0 : i32
    %c0_i32_0 = arith.constant 0 : i32
    return %arg0, %arg1, %c0_i32 : i32, i32, i32
  }
  func.func @transform_1(%arg0: i32, %arg1: i32) -> (i32, i32, i32) {
    %c0_i32 = arith.constant 0 : i32
    %c0_i32_0 = arith.constant 0 : i32
    %c0_i32_1 = arith.constant 0 : i32
    %c0_i32_2 = arith.constant 0 : i32
    return %c0_i32, %c0_i32_0, %c0_i32_1 : i32, i32, i32
  }
  func.func @transform_2(%arg0: i32, %arg1: i32) -> (i32, i32, i32) {
    %c0_i32 = arith.constant 0 : i32
    %c0_i32_0 = arith.constant 0 : i32
    %c0_i32_1 = arith.constant 0 : i32
    %c0_i32_2 = arith.constant 0 : i32
    return %c0_i32, %c0_i32_0, %c0_i32_1 : i32, i32, i32
  }
  func.func @transform_3(%arg0: i32, %arg1: i32) -> (i32, i32, i32, i32) {
    %c0_i32 = arith.constant 0 : i32
    %c0_i32_0 = arith.constant 0 : i32
    %c0_i32_1 = arith.constant 0 : i32
    %c0_i32_2 = arith.constant 0 : i32
    return %arg0, %c0_i32, %c0_i32_0, %c0_i32_1 : i32, i32, i32, i32
  }
  func.func @transform_4(%arg0: i32, %arg1: i32) -> (i32, i32) {
    %c0_i32 = arith.constant 0 : i32
    %c0_i32_0 = arith.constant 0 : i32
    %c0_i32_1 = arith.constant 0 : i32
    return %c0_i32, %c0_i32_0 : i32, i32
  }
  func.func @transform_5(%arg0: i32, %arg1: i32) -> (i32, i32) {
    %c0_i32 = arith.constant 0 : i32
    %c0_i32_0 = arith.constant 0 : i32
    %c0_i32_1 = arith.constant 0 : i32
    return %c0_i32, %c0_i32_0 : i32, i32
  }
  func.func @transform_6(%arg0: i32, %arg1: i32) -> (i32, i32) {
    %c0_i32 = arith.constant 0 : i32
    %c0_i32_0 = arith.constant 0 : i32
    %c0_i32_1 = arith.constant 0 : i32
    return %c0_i32, %c0_i32_0 : i32, i32
  }
  func.func @transform_7(%arg0: i32, %arg1: i32) -> (i32, i32, i32) {
    %c0_i32 = arith.constant 0 : i32
    %c0_i32_0 = arith.constant 0 : i32
    return %arg0, %c0_i32, %arg1 : i32, i32, i32
  }
}

</mosaic_0001>

<bundles_post_ra>
// kernel: tpu_custom_call.1
= control target key start
LH: loop header
LB: loop body
LE: loop exit
PB: predicated region body
PF: predicated region fallthrough
CT: control target
= control target key end

     0   :  { %s4752_s0 = inlined_call_operand.hbm [shape: f32[2,32,8], index: 0, kind: input, shape index: {}]   ;;  %s4753_s1 = inlined_call_operand.hbm [shape: f32[3,8,128], index: 1, kind: input, shape index: {}]   ;;  %s4754_s2 = inlined_call_operand.hbm [shape: f32[2,128,128], index: 2, kind: input, shape index: {}]   ;;  %s4755_s3 = inlined_call_operand.hbm [shape: f32[2,3,1,128], index: 3, kind: input, shape index: {}]   ;;  %s4756_s4 = inlined_call_operand.hbm [shape: f32[1,128], index: 4, kind: input, shape index: {}]   ;;  %s4757_s5 = inlined_call_operand.hbm [shape: f32[1,128], index: 5, kind: input, shape index: {}]   ;;  %s4758_s6 = inlined_call_operand.<no memory space> [shape: f32[1,1], index: 6, kind: input, shape index: {}]   ;;  %s4759_s7 = inlined_call_operand.hbm [shape: f32[2,1,32], index: 7, kind: output, shape index: {}]  }
   0x1   :  { %4766 = sst [smem:[#allocation23_spill]] %s4752_s0  ;;  %v12_v0 = vstv %s4758_s6 }
   0x2   :  { %4767 = sst [smem:[#allocation24_spill]] %s4753_s1  ;;  %13 = vst [vmem:[#allocation2] sm:$0x1] %v12_v0 }
   0x3   :  { %4768 = sst [smem:[#allocation25_spill]] %s4754_s2 }
   0x4   :  { %4769 = sst [smem:[#allocation26_spill]] %s4756_s4 }
   0x5   :  { %14 = vsyncpa [#allocation4], 0 }
   0x6   :  { %16 = vsyncpa [#allocation4 + $0x1], 0 }
   0x7   :  { %17 = vsyncpa [#allocation7], 0 }
   0x8   :  { %18 = vsyncpa [#allocation10], 0 }
   0x9   :  { %20 = vsyncpa [#allocation10 + $0x1], 0 }
   0xa   :  { %21 = vsyncpa [#allocation13], 0 }
   0xb   :  { %22 = vsyncpa [#allocation5], 0 }
   0xc   :  { %24 = vsyncpa [#allocation5 + $0x1], 0  ;;  %s3305_s26 = smov 0   ;;  %s3307_s27 = smov 0  }
   0xd   :  { %s3309_s28 = smov 0   ;;  %s3311_s29 = smov 0  }
   0xe   :  { %s3313_s30 = smov 0   ;;  %s3315_s6 = smov 0  }
   0xf LB: > { %4770 = sst [smem:[#allocation21_spill]] %s3219_s26  ;;  %s3336_s8 = sadd.s32 4294967295, %s3239_s6   ;;  %s3239_s6 = sphi %s3315_s6, %s30_s6   ;;  %s3235_s30 = sphi %s3313_s30, %s4822_s30   ;;  %s3231_s29 = sphi %s3311_s29, %s4821_s29   ;;  %s3227_s28 = sphi %s3309_s28, %s4820_s28   ;;  %s3223_s27 = sphi %s3307_s27, %s4819_s27   ;;  %s3219_s26 = sphi %s3305_s26, %s4818_s26  }
  0x10   : > { %s2418_s9 = sadd.s32 4294967294, %s3239_s6   ;;  %p64_p0 = scmp.ne.s32.totalorder %s3223_s27, %s3219_s26 }
  0x11   : > { %p4760_p1 = scmp.eq.s32.totalorder %s3336_s8, 0  ;;  %p227_p3 = scmp.eq.s32.totalorder %s2418_s9, 1 }
  0x12   : > { %p2419_p5 = scmp.ge.s32.totalorder %s3239_s6, 1  ;;  %p234_p7 = scmp.lt.s32.totalorder %s3239_s6, 3 }
  0x13   : > { %p3345_p4 = por %p4760_p1, %p64_p0  ;;  %p3350_p6 = por %p227_p3, %p64_p0 }
  0x14   : > { %p3355_p8 = pnand %p2419_p5, %p234_p7  ;;  %s3241_s13 = smov [#allocation6]  }
  0x15   : > { %s4771_s10 = scalar_select %p3345_p4, 1, 0 }
  0x16   : > { %s4772_s11 = scalar_select %p3350_p6, 1, 0 }
  0x17   : > { %s4774_s12 = scalar_select %p3355_p8, 1, 0 }
  0x18   : > { %4773 = sst [smem:[#allocation22_spill]] %s4772_s11  ;;  %s246_s14 = sshll.u32 %s3241_s13, 4  ;;  %s3359_s14 = int_to_ptr.vmem [resolvable:$true] %s246_s14 }
  0x19   : > { %p2819_p9 = pneg %p3355_p8  ;;  %s3242_s16 = smov [#allocation11]  }
  0x1a   : > { %s273_s17 = sshll.u32 %s3242_s16, 4  ;;  %s3243_s18 = smov [#allocation8]   ;;  %s3370_s17 = int_to_ptr.vmem [resolvable:$true] %s273_s17 }
  0x1b   : > { %p3366_p11 = pnand %p2819_p9, %p4760_p1  ;;  %s3372_s19 = sshll.u32 %s3243_s18, 4  ;;  %s260_s19 = int_to_ptr.vmem [resolvable:$true] %s3372_s19 }
  0x1c   : > { %s4776_s1 = sld [smem:[#allocation24_spill]] }
  0x1d   : > { %p3382_p13 = pneg %p3366_p11 }
  0x22   : > { %s2969_s22 = scalar_lea.hbm %s4776_s1, 384 }
  0x23   : > { %p2970_p12 = scmp.ne.s32.totalorder %s4776_s1, %s2969_s22  ;;  %p2976_p5 = scmp.lt.u32.totalorder %s2969_s22, %s4776_s1 }
  0x25   : > { %p2972_p0 = pnand %p3382_p13, %p2970_p12 }
  0x27   : > { %p2973_p3 = pneg %p2972_p0 }
  0x29   : > { %p2978_p7 = pnand %p2976_p5, %p2973_p3 }
  0x2b   : > { %2981 = shalt.err (!%p2978_p7)
}
  0x2c   : > { %s2982_s16 = scalar_lea.vmem %s3359_s14, 384  ;;  %p2990_p2 = scmp.lt.s32.totalorder %s3359_s14, %s3359_s14 }
  0x2d   : > { %p2983_p9 = scmp.ne.s32.totalorder %s3359_s14, %s2982_s16  ;;  %p2991_p6 = scmp.lt.s32.totalorder %s2982_s16, %s2982_s16 }
  0x2f   : > { %p2985_p10 = pnand %p2983_p9, %p3382_p13  ;;  %p2992_p12 = por %p2991_p6, %p2990_p2 }
  0x31   : > { %p2986_p1 = pneg %p2985_p10 }
  0x33   : > { %p2993_p0 = pnand %p2992_p12, %p2986_p1 }
  0x35   : > { %2996 = shalt.err (!%p2993_p0)
}
  0x36   : > { %s4765_s18 = smov 128   ;;  %s3245_s20 = smov 8  }
  0x37   : > { %2822 = dma.hbm_to_vmem [thread:$0]  (!%p3366_p11), %s4776_s1, 384, %s3359_s14, [#allocation7], %s4765_s18, %s4765_s18, %s3245_s20  }
  0x38   : > { %s4778_s4 = sld [smem:[#allocation26_spill]] }
  0x3e   : > { %s2997_s9 = scalar_lea.hbm %s4778_s4, 16 }
  0x3f   : > { %p2998_p1 = scmp.ne.s32.totalorder %s4778_s4, %s2997_s9  ;;  %p3004_p10 = scmp.lt.u32.totalorder %s2997_s9, %s4778_s4 }
  0x41   : > { %p3000_p2 = pnand %p2998_p1, %p3382_p13 }
  0x43   : > { %p3001_p6 = pneg %p3000_p2 }
  0x45   : > { %p3006_p3 = pnand %p3004_p10, %p3001_p6 }
  0x47   : > { %3009 = shalt.err (!%p3006_p3)
}
  0x48   : > { %s3010_s14 = scalar_lea.vmem %s3370_s17, 16  ;;  %s3017_s21 = scalar_lea.vmem %s3370_s17, 32 }
  0x49   : > { %p3011_p5 = scmp.ne.s32.totalorder %s3370_s17, %s3010_s14  ;;  %p3018_p12 = scmp.lt.s32.totalorder %s3370_s17, %s3370_s17 }
  0x4a   : > { %p3019_p0 = scmp.lt.s32.totalorder %s3017_s21, %s3010_s14 }
  0x4b   : > { %p3013_p7 = pnand %p3011_p5, %p3382_p13 }
  0x4c   : > { %p3020_p1 = por %p3019_p0, %p3018_p12 }
  0x4d   : > { %p3014_p9 = pneg %p3013_p7 }
  0x4f   : > { %p3021_p2 = pnand %p3020_p1, %p3014_p9 }
  0x51   : > { %3024 = shalt.err (!%p3021_p2)
}
  0x52   : > { %2828 = dma.hbm_to_vmem [thread:$0]  (!%p3366_p11), %s4778_s4, 16, %s3370_s17, [#allocation10]  }
  0x53   : > { %s4779_s2 = sld [smem:[#allocation25_spill]] }
  0x59   : > { %s3025_s24 = scalar_lea.hbm %s4779_s2, 4096 }
  0x5a   : > { %p3026_p6 = scmp.ne.s32.totalorder %s4779_s2, %s3025_s24  ;;  %p3032_p5 = scmp.lt.u32.totalorder %s3025_s24, %s4779_s2 }
  0x5c   : > { %p3028_p10 = pnand %p3026_p6, %p3382_p13 }
  0x5e   : > { %p3029_p3 = pneg %p3028_p10 }
  0x60   : > { %p3034_p7 = pnand %p3032_p5, %p3029_p3 }
  0x62   : > { %3037 = shalt.err (!%p3034_p7)
}
  0x63   : > { %s3038_s21 = scalar_lea.vmem %s260_s19, 4096  ;;  %p3046_p1 = scmp.lt.s32.totalorder %s260_s19, %s260_s19 }
  0x64   : > { %p3039_p9 = scmp.ne.s32.totalorder %s260_s19, %s3038_s21  ;;  %p3047_p2 = scmp.lt.s32.totalorder %s3038_s21, %s3038_s21 }
  0x66   : > { %p3041_p12 = pnand %p3039_p9, %p3382_p13  ;;  %p3048_p4 = por %p3047_p2, %p3046_p1 }
  0x68   : > { %p3042_p0 = pneg %p3041_p12 }
  0x6a   : > { %p3049_p8 = pnand %p3048_p4, %p3042_p0 }
  0x6c   : > { %3052 = shalt.err (!%p3049_p8)
}
  0x6d   : > { %2825 = dma.hbm_to_vmem [thread:$0]  (!%p3366_p11), %s4779_s2, 4096, %s260_s19, [#allocation7], %s4765_s18, %s4765_s18, %s3245_s20  }
  0x6e   : > { %s3246_s11 = smov [#allocation12]   ;;  %s3053_s9 = scalar_lea.hbm %s4757_s5, 16 }
  0x6f   : > { %s284_s22 = sshll.u32 %s3246_s11, 4  ;;  %p3054_p4 = scmp.ne.s32.totalorder %s4757_s5, %s3053_s9  ;;  %s285_s22 = int_to_ptr.vmem [resolvable:$true] %s284_s22 }
  0x70   : > { %p3060_p10 = scmp.lt.u32.totalorder %s3053_s9, %s4757_s5 }
  0x71   : > { %p3056_p8 = pnand %p3054_p4, %p3382_p13 }
  0x73   : > { %p3057_p6 = pneg %p3056_p8 }
  0x75   : > { %p3062_p3 = pnand %p3060_p10, %p3057_p6 }
  0x77   : > { %3065 = shalt.err (!%p3062_p3)
}
  0x78   : > { %s3066_s19 = scalar_lea.vmem %s285_s22, 16  ;;  %s3073_s17 = scalar_lea.vmem %s285_s22, 32 }
  0x79   : > { %p3067_p5 = scmp.ne.s32.totalorder %s285_s22, %s3066_s19  ;;  %p3074_p12 = scmp.lt.s32.totalorder %s285_s22, %s285_s22 }
  0x7a   : > { %p3075_p0 = scmp.lt.s32.totalorder %s3073_s17, %s3066_s19 }
  0x7b   : > { %p3069_p7 = pnand %p3067_p5, %p3382_p13 }
  0x7c   : > { %p3076_p1 = por %p3075_p0, %p3074_p12 }
  0x7d   : > { %p3070_p9 = pneg %p3069_p7 }
  0x7f   : > { %p3077_p2 = pnand %p3076_p1, %p3070_p9 }
  0x81   : > { %3080 = shalt.err (!%p3077_p2)
}
  0x82   : > { %2831 = dma.hbm_to_vmem [thread:$0]  (!%p3366_p11), %s4757_s5, 16, %s285_s22, [#allocation13]  }
  0x83   : > { %s42_s25 = sadd.s32 1, %s3235_s30  ;;  %s51_s23 = sadd.s32 1, %s3227_s28 }
  0x84   : > { %p44_p13 = scmp.ge.s32.totalorder %s42_s25, 2  ;;  %p58_p4 = scmp.ne.s32.totalorder %s3227_s28, %s3223_s27 }
  0x85   : > { %p59_p8 = scmp.eq.s32.totalorder %s3239_s6, 0  ;;  %p2847_p6 = scmp.lt.s32.totalorder %s3239_s6, 2 }
  0x86   : > { %s4824_s25 = smov (%p44_p13, %s42_s25), 0  ;;  %p4780_p3 = scmp.eq.s32.totalorder %s3336_s8, 1 }
  0x87   : > { %p60_p10 = por %p59_p8, %p58_p4  ;;  %s46_s24 = ssub.s32 %s3235_s30, %s4824_s25 }
  0x88   : > { %p3480_p5 = por %p4780_p3, %p58_p4  ;;  %s3487_s9 = sand.u32 1, %s3227_s28  }
  0x89   : > { %p49_p11 = scmp.eq.s32.totalorder %s46_s24, 0  ;;  %s2425_s22 = sshll.u32 %s3487_s9, 5 }
  0x8a   : > { %s2504_s13 = sshll.u32 %s3235_s30, 9  ;;  %s4782_s0 = sld [smem:[#allocation23_spill]] }
  0x8b   : > { %s3492_s16 = scalar_select %p49_p11, %s3227_s28, %s51_s23  }
  0x8c   : > { %s302_s17 = scalar_lea.vmem [#allocation3], %s2425_s22  ;;  %p3501_p7 = pnand %p2847_p6, %p60_p10 }
  0x8d   : > { %s311_s26 = sshll.u32 %s302_s17, 4  ;;  %s299_s24 = scalar_lea.sflag [#allocation4], %s3487_s9  ;;  %s3505_s26 = int_to_ptr.vmem [resolvable:$true] %s311_s26 }
  0x8e   : > { %p3083_p12 = pneg %p3501_p7 }
  0x90   : > { %s3497_s19 = scalar_lea.hbm %s4782_s0, %s2504_s13  ;;  %s3086_s21 = scalar_lea.hbm %s4782_s0, 1024 }
  0x91   : > { %s3081_s14 = scalar_lea.hbm %s3497_s19, 512  ;;  %p3087_p2 = scmp.lt.u32.totalorder %s3497_s19, %s4782_s0 }
  0x92   : > { %p3082_p9 = scmp.ne.s32.totalorder %s3497_s19, %s3081_s14  ;;  %p3088_p13 = scmp.lt.u32.totalorder %s3086_s21, %s3081_s14 }
  0x93   : > { %p3090_p8 = scmp.lt.u32.totalorder %s3081_s14, %s3497_s19 }
  0x94   : > { %p3084_p0 = pnand %p3083_p12, %p3082_p9  ;;  %p3089_p4 = por %p3088_p13, %p3087_p2 }
  0x96   : > { %p3085_p1 = pneg %p3084_p0  ;;  %p3091_p6 = por %p3090_p8, %p3089_p4 }
  0x98   : > { %p3092_p10 = pnand %p3091_p6, %p3085_p1 }
  0x9a   : > { %3095 = shalt.err (!%p3092_p10)
}
  0x9b   : > { %s3096_s23 = scalar_lea.vmem %s3505_s26, 512  ;;  %s3247_s22 = smov [#allocation3]  }
  0x9c   : > { %p3097_p3 = scmp.ne.s32.totalorder %s3505_s26, %s3096_s23  ;;  %s3101_s13 = sshll.u32 %s3247_s22, 4  ;;  %s3102_s13 = int_to_ptr.vmem [resolvable:$false] %s3101_s13 }
  0x9d   : > { %s3103_s18 = scalar_lea.vmem %s3102_s13, 1024  ;;  %p3104_p0 = scmp.lt.s32.totalorder %s3505_s26, %s3102_s13 }
  0x9e   : > { %p3099_p11 = pnand %p3097_p3, %p3083_p12  ;;  %p3105_p2 = scmp.lt.s32.totalorder %s3103_s18, %s3096_s23 }
  0xa0   : > { %p3100_p9 = pneg %p3099_p11  ;;  %p3106_p13 = por %p3105_p2, %p3104_p0 }
  0xa2   : > { %p3107_p4 = pnand %p3106_p13, %p3100_p9 }
  0xa4   : > { %3110 = shalt.err (!%p3107_p4)
}
  0xa5   : > { %s4784_s14 = smov 128   ;;  %s2746_s21 = smul.u32 3, %s3487_s9 }
  0xa6   : > { %2835 = dma.hbm_to_vmem [thread:$0]  (!%p3501_p7), %s3497_s19, 512, %s3505_s26, %s299_s24, %s4784_s14, %s4784_s14, %s3245_s20  }
  0xa7   : > { %s2747_s17 = smul.u32 48, %s3235_s30  ;;  %s325_s18 = scalar_lea.vmem [#allocation9], %s2746_s21 }
  0xa8   : > { %s332_s0 = sshll.u32 %s325_s18, 4  ;;  %s4785_s1 = sand.u32 1, %s3239_s6   ;;  %s3546_s0 = int_to_ptr.vmem [resolvable:$true] %s332_s0 }
  0xa9   : > { %s3544_s13 = scalar_lea.hbm %s4755_s3, %s2747_s17  ;;  %s3550_s2 = scalar_lea.sflag [#allocation10], %s4785_s1 }
  0xaa   : > { %s3111_s4 = scalar_lea.hbm %s3544_s13, 48  ;;  %s3116_s19 = scalar_lea.hbm %s4755_s3, 96 }
  0xab   : > { %p3112_p1 = scmp.ne.s32.totalorder %s3544_s13, %s3111_s4  ;;  %p3117_p10 = scmp.lt.u32.totalorder %s3544_s13, %s4755_s3 }
  0xac   : > { %p3118_p3 = scmp.lt.u32.totalorder %s3116_s19, %s3111_s4  ;;  %p3120_p9 = scmp.lt.u32.totalorder %s3111_s4, %s3544_s13 }
  0xad   : > { %p3114_p8 = pnand %p3112_p1, %p3083_p12 }
  0xae   : > { %p3119_p11 = por %p3118_p3, %p3117_p10 }
  0xaf   : > { %p3115_p6 = pneg %p3114_p8 }
  0xb0   : > { %p3121_p0 = por %p3120_p9, %p3119_p11 }
  0xb2   : > { %p3122_p2 = pnand %p3121_p0, %p3115_p6 }
  0xb4   : > { %3125 = shalt.err (!%p3122_p2)
}
  0xb5   : > { %s3126_s1 = scalar_lea.vmem %s3546_s0, 48  ;;  %s3248_s14 = smov [#allocation9]  }
  0xb6   : > { %p3127_p13 = scmp.ne.s32.totalorder %s3546_s0, %s3126_s1  ;;  %s3131_s21 = sshll.u32 %s3248_s14, 4  ;;  %s3132_s21 = int_to_ptr.vmem [resolvable:$false] %s3131_s21 }
  0xb7   : > { %s3133_s17 = scalar_lea.vmem %s3132_s21, 96  ;;  %p3134_p8 = scmp.lt.s32.totalorder %s3546_s0, %s3132_s21 }
  0xb8   : > { %p3129_p4 = pnand %p3127_p13, %p3083_p12  ;;  %p3135_p10 = scmp.lt.s32.totalorder %s3133_s17, %s3126_s1 }
  0xba   : > { %p3130_p1 = pneg %p3129_p4  ;;  %p3136_p3 = por %p3135_p10, %p3134_p8 }
  0xbc   : > { %p3137_p11 = pnand %p3136_p3, %p3130_p1 }
  0xbe   : > { %3140 = shalt.err (!%p3137_p11)
}
  0xbf   : > { %s3249_s4 = smov 16   ;;  %s3250_s23 = smov 1  }
  0xc0   : > { %2838 = dma.hbm_to_vmem [thread:$0]  (!%p3501_p7), %s3544_s13, 48, %s3546_s0, %s3550_s2, %s3249_s4, %s3249_s4, %s3250_s23  }
  0xc1   : > { %p4786_p12 = scmp.ne.s32.totalorder %s4774_s12, 0 }
  0xc2   : > { %s3579_s22 = sand.u32 (!%p4786_p12), 1, %s3223_s27   ;;  %p4787_p6 = scmp.ne.s32.totalorder (!%p4786_p12), %s4771_s10, 0 }
  0xc3   : > { %344 = sbr.rel (%p4786_p12) target bundleno = 1239 (0x4d7), region = 48  ;;  %s2430_s18 = sshll.u32 (!%p4786_p12), %s3579_s22, 5 }
  0xc4   : > { %s347_s20 = scalar_lea.sflag (!%p4786_p12), [#allocation4], %s3579_s22  ;;  %s350_s9 = scalar_lea.vmem (!%p4786_p12), [#allocation3], %s2430_s18 }
  0xca   : > { %3194 = dma.done.wait (%p4787_p6), %s347_s20, 512  }
  0xcb   : > { %3196 = vsyncadd (%p4787_p6), %s347_s20, 4294966784  ;;  %p4788_p9 = scmp.eq.s32.totalorder %s3336_s8, 0 }
  0xcd   : > { %3198 = dma.done.wait (%p4788_p9), [#allocation7], 4480   ;;  %p4789_p7 = pmov %p4788_p9 }
  0xce   : > { %s363_s0 = sand.u32 1, %s3336_s8   ;;  %s2748_s2 = smul.u32 3, %s3579_s22 }
  0xcf   : > { %3200 = vsyncadd (%p4789_p7), [#allocation7], 4294962816  ;;  %s364_s12 = scalar_lea.sflag [#allocation10], %s363_s0 }
  0xd0   : > { %s3593_s11 = scalar_lea.vmem [#allocation9], %s2748_s2 }
  0xd1   : > { %3202 = dma.done.wait (%p4787_p6), %s364_s12, 48  }
  0xd2   : > { %3204 = vsyncadd (%p4787_p6), %s364_s12, 4294967248  ;;  %p4790_p0 = pmov %p4789_p7 }
  0xd4   : > { %3206 = dma.done.wait (%p4790_p0), [#allocation10], 16   ;;  %p4791_p2 = pmov %p4790_p0 }
  0xd5   : > { %p4792_p13 = pmov %p4790_p0 }
  0xd6   : > { %3208 = vsyncadd (%p4791_p2), [#allocation10], 4294967280 }
  0xd7   : > { %3210 = dma.done.wait (%p4792_p13), [#allocation13], 16   ;;  %p4793_p4 = pmov %p4790_p0 }
  0xd8   : > { %vm423_vm0 = vcmask 64512   ;;  %v422_v1 = vld [vmem:[#allocation6] sm:$0xff]  ;;  %v3607_v3 = vld [vmem:[%s350_s9 + $0x8] sm:$0xff]  ;;  %v3610_v4 = vld [vmem:[%s350_s9 + $0x10] sm:$0xff]  ;;  %s2501_s8 = sshll.u32 %s3231_s29, 4  ;;  %s409_s10 = scalar_lea.vmem [#allocation14], %s3579_s22 }
  0xd9   : > { %3212 = vsyncadd (%p4793_p4), [#allocation13], 4294967280  ;;  %v411_v2 = vld [vmem:[%s350_s9] sm:$0xff]  ;;  %2565 = vmatprep.subr.mxu0 %v422_v1  ;;  %v938_v5 = vld [vmem:[#allocation6 + $0x8] sm:$0xff]  ;;  %s2278_s13 = sshll.u32 %s409_s10, 4  ;;  %s4703_s24 = scalar_lea.hbm %s4759_s7, %s2501_s8  ;;  %s4705_s13 = int_to_ptr.vmem [resolvable:$true] %s2278_s13 }
  0xda   : > { %2567 = vmatprep.mubr.msk.f32.mxu0 %vm423_vm0, %v411_v2  ;;  %2566 = vmatpush3.msra.mxu0 %v422_v1  ;;  %v3616_v6 = vld [vmem:[%s350_s9 + $0x18] sm:$0xff]  ;;  %v1955_v8 = vld [vmem:[#allocation8 + $0x8] sm:$0xff]  ;;  %v1956_v10 = vld [vmem:[#allocation8 + $0x10] sm:$0xff]  ;;  %s2265_s1 = scalar_lea.sflag [#allocation5], %s3579_s22  ;;  %s3141_s14 = scalar_lea.vmem %s4705_s13, 16 }
  0xdb   : > { %2573 = vmatprep.subr.mxu1 %v938_v5  ;;  %2568 = vmatmul.mubr.msk.f32.vlgmr.msra.gmra.mrb[0].mxu0 %vm423_vm0, %v3607_v3  ;;  %v1954_v7 = vld [vmem:[#allocation8] sm:$0xff]  ;;  %v1957_v11 = vld [vmem:[#allocation8 + $0x18] sm:$0xff]  ;;  %v1959_v14 = vld [vmem:[#allocation8 + $0x28] sm:$0xff]  ;;  %p3142_p1 = scmp.ne.s32.totalorder %s4705_s13, %s3141_s14  ;;  %s3261_s29 = smov [#allocation14]  }
  0xdc   : > { %2574 = vmatpush3.msra.mxu1 %v938_v5  ;;  %2570 = vmatprep.mubr.msk.f32.mxu0 %vm423_vm0, %v3610_v4  ;;  %v2676_v9 = vpack.c.bf16 %v1955_v8, %v1954_v7  ;;  %v2680_v12 = vpack.c.bf16 %v1957_v11, %v1956_v10  ;;  %v1958_v13 = vld [vmem:[#allocation8 + $0x20] sm:$0xff]  ;;  %v1960_v16 = vld [vmem:[#allocation8 + $0x30] sm:$0xff]  ;;  %v1961_v17 = vld [vmem:[#allocation8 + $0x38] sm:$0xff]  ;;  %v3251_v10 = vmov 683565275   ;;  %s3145_s21 = sshll.u32 %s3261_s29, 4  ;;  %s3146_s21 = int_to_ptr.vmem [resolvable:$false] %s3145_s21 }
  0xdd   : > { %2575 = vmatprep.mubr.msk.f32.mxu1 %vm423_vm0, %v411_v2  ;;  %v2684_v15 = vpack.c.bf16 %v1959_v14, %v1958_v13  ;;  %v2688_v18 = vpack.c.bf16 %v1961_v17, %v1960_v16  ;;  %v1962_v19 = vld [vmem:[#allocation8 + $0x40] sm:$0xff]  ;;  %v1963_v20 = vld [vmem:[#allocation8 + $0x48] sm:$0xff]  ;;  %v1964_v22 = vld [vmem:[#allocation8 + $0x50] sm:$0xff]  ;;  %v3252_v14 = vmov 2475754826   ;;  %p3143_p8 = pnand %p3142_p1, %p3480_p5  ;;  %s3147_s17 = scalar_lea.vmem %s3146_s21, 32 }
  0xde   : > { %2576 = vmatmul.mubr.msk.f32.vlgmr.msra.gmra.mrb[0].mxu1 %vm423_vm0, %v3607_v3  ;;  %2677 = vmatprep.subr.bf16.mxu1 %v2676_v9  ;;  %v2692_v21 = vpack.c.bf16 %v1963_v20, %v1962_v19  ;;  %v1965_v23 = vld [vmem:[#allocation8 + $0x58] sm:$0xff]  ;;  %v1966_v24 = vld [vmem:[#allocation8 + $0x60] sm:$0xff]  ;;  %v1967_v26 = vld [vmem:[#allocation8 + $0x68] sm:$0xff]  ;;  %v3253_v16 = vmov 2131351028   ;;  %p3148_p3 = scmp.lt.s32.totalorder %s4705_s13, %s3146_s21  ;;  %p3149_p11 = scmp.lt.s32.totalorder %s3147_s17, %s3141_s14 }
  0xdf   : > { %2578 = vmatprep.mubr.msk.f32.mxu1 %vm423_vm0, %v3610_v4  ;;  %2571 = vmatmul.mubr.msk.f32.gmra.mrb[2].mxu0 %vm423_vm0, %v3616_v6  ;;  %v2696_v25 = vpack.c.bf16 %v1965_v23, %v1964_v22  ;;  %v2700_v27 = vpack.c.bf16 %v1967_v26, %v1966_v24  ;;  %v1968_v28 = vld [vmem:[#allocation8 + $0x70] sm:$0xff]  ;;  %v1969_v29 = vld [vmem:[#allocation8 + $0x78] sm:$0xff]  ;;  %v3628_v30 = vld [vmem:[#allocation11] ss:$0 sm:$0xff]  ;;  %v3255_v20 = vmov 920167782   ;;  %p3144_p10 = pneg %p3143_p8 }
  0xe0   : > { %2583 = vmatprep.mubr.msk.f32.mxu0 %vm423_vm0, %v411_v2  ;;  %2679 = vmatpush3.bf16.msra.mxu1 %v2676_v9  ;;  %v2704_v31 = vpack.c.bf16 %v1969_v29, %v1968_v28  ;;  %p3150_p12 = por %p3149_p11, %p3148_p3 }
  0xe1   : > { %2681 = vmatprep.subr.bf16.mxu1 %v2680_v12 }
  0xe2   : > { %2579 = vmatmul.mubr.msk.f32.gmra.mrb[2].mxu1 %vm423_vm0, %v3616_v6  ;;  %p3151_p6 = pnand %p3150_p12, %p3144_p10 }
  0xe4   : > { %2683 = vmatpush3.bf16.msra.mxu1 %v2680_v12 }
  0xe5   : > { %2685 = vmatprep.subr.bf16.mxu1 %v2684_v15 }
  0xe8   : > { %2687 = vmatpush3.bf16.msra.mxu1 %v2684_v15 }
  0xe9   : > { %2689 = vmatprep.subr.bf16.mxu1 %v2688_v18 }
  0xec   : > { %2691 = vmatpush3.bf16.msra.mxu1 %v2688_v18  ;;  %v3254_v18 = vmov 2102212464  }
  0xed   : > { %2693 = vmatprep.subr.bf16.mxu1 %v2692_v21 }
  0xf0   : > { %2695 = vmatpush3.bf16.msra.mxu1 %v2692_v21 }
  0xf1   : > { %2697 = vmatprep.subr.bf16.mxu1 %v2696_v25 }
  0xf4   : > { %2699 = vmatpush3.bf16.msra.mxu1 %v2696_v25 }
  0xf5   : > { %2701 = vmatprep.subr.bf16.mxu1 %v2700_v27 }
  0xf8   : > { %2703 = vmatpush3.bf16.msra.mxu1 %v2700_v27  ;;  %v3256_v27 = vmov 1326507024  }
  0xf9   : > { %2705 = vmatprep.subr.bf16.mxu1 %v2704_v31 }
  0xfc   : > { %2707 = vmatpush3.bf16.msra.mxu1 %v2704_v31 }
 0x1ae   : > { %v2569_v32 = vpop.f32.mrb[0].mxu0 }
 0x1af   : > { %v3631_v33 = vadd.f32 %v2569_v32, %v3628_v30  ;;  %v502_v34 = vpop.f32.mrb[1].mxu0 }
 0x1b0   : > { %v3634_v35 = vadd.f32 %v3628_v30, %v502_v34 }
 0x1b1   : > { %v625_v36 = vand.u32 2147483647, %v3631_v33  ;;  %v628_v37 = vand.u32 2139095040, %v3631_v33  ;;  %v3657_v61 = vpop.f32.mrb[0].mxu1  ;;  %vm627_vm14 = vcmp.lt.s32.totalorder %v3631_v33, 0 }
 0x1b2   : > { %v521_v38 = vand.u32 2147483647, %v3634_v35  ;;  %v524_v39 = vand.u32 2139095040, %v3634_v35  ;;  %v2572_v40 = vpop.f32.mrb[2].mxu0 }
 0x1b3   : > { %v629_v41 = vshrl.u32 %v628_v37, 23  ;;  %v632_v42 = vand.u32 8388607, %v625_v36  ;;  %v3643_v43 = vadd.f32 %v2572_v40, %v3628_v30  ;;  %v512_v44 = vpop.f32.mrb[3].mxu0  ;;  %vm3734_vm13 = vcmp.le.f32.partialorder %v625_v36, 0.7853982 }
 0x1b4   : > { %v525_v45 = vshrl.u32 %v524_v39, 23  ;;  %v528_v46 = vand.u32 8388607, %v521_v38  ;;  %v3650_v53 = vadd.f32 %v3628_v30, %v512_v44 }
 0x1b5   : > { %v2444_v47 = vadd.s32 4294967169, %v629_v41  ;;  %v833_v48 = vand.u32 2147483647, %v3643_v43  ;;  %v836_v50 = vand.u32 2139095040, %v3643_v43  ;;  %v633_v51 = vor.u32 8388608, %v632_v42 }
 0x1b6   : > { %v2440_v49 = vadd.s32 4294967169, %v525_v45  ;;  %v529_v54 = vor.u32 8388608, %v528_v46  ;;  %v729_v60 = vand.u32 2147483647, %v3650_v53  ;;  %v732_v8 = vand.u32 2139095040, %v3650_v53 }
 0x1b7   : > { %v635_v52 = vadd.s32 1, %v2444_v47  ;;  %v837_v56 = vshrl.u32 %v836_v50, 23  ;;  %v3654_v57 = vand.u32 8388607, %v833_v48  ;;  %v3659_v0 = vshll.u32 %v633_v51, 8 }
 0x1b8   : > { %v531_v55 = vadd.s32 1, %v2440_v49  ;;  %v3663_v5 = vshll.u32 %v529_v54, 8  ;;  %v733_v36 = vshrl.u32 %v732_v8, 23 }
 0x1b9   : > { %vm636_vm1 = vcmp.gt.s32.totalorder %v635_v52, 0  ;;  %v2452_v59 = vadd.s32 4294967169, %v837_v56  ;;  %v841_v7 = vor.u32 8388608, %v3654_v57 }
 0x1ba   : > { %v637_v58 = vsel %vm636_vm1, %v635_v52, 0  ;;  %vm532_vm2 = vcmp.gt.s32.totalorder %v531_v55, 0 }
 0x1bb   : > { %v638_v62 = vshrl.u32 %v637_v58, 5  ;;  %v639_v63 = vand.u32 31, %v637_v58  ;;  %v533_v1 = vsel %vm532_vm2, %v531_v55, 0  ;;  %v3668_v13 = vadd.s32 1, %v2452_v59 }
 0x1bc   : > { %v3661_v2 = vshrl.u32 %v533_v1, 5  ;;  %v535_v12 = vand.u32 31, %v533_v1 }
 0x1bd   : > { %v640_v9 = vsub.s32 32, %v639_v63  ;;  %v642_v11 = vshll.u32 %v3251_v10, %v639_v63  ;;  %v645_v15 = vshll.u32 %v3252_v14, %v639_v63  ;;  %v648_v17 = vshll.u32 %v3253_v16, %v639_v63 }
 0x1be   : > { %v651_v19 = vshll.u32 %v3254_v18, %v639_v63  ;;  %v654_v21 = vshll.u32 %v3255_v20, %v639_v63  ;;  %vm657_vm3 = vcmp.lt.s32.totalorder %v638_v62, 1  ;;  %vm658_vm4 = vcmp.lt.s32.totalorder %v638_v62, 2 }
 0x1bf   : > { %v643_v22 = vshrl.u32 %v3252_v14, %v640_v9  ;;  %v646_v23 = vshrl.u32 %v3253_v16, %v640_v9  ;;  %v649_v24 = vshrl.u32 %v3254_v18, %v640_v9  ;;  %v641_v25 = vshrl.u32 %v3251_v10, %v640_v9 }
 0x1c0   : > { %v652_v26 = vshrl.u32 %v3255_v20, %v640_v9  ;;  %v655_v28 = vshrl.u32 %v3256_v27, %v640_v9  ;;  %v536_v34 = vsub.s32 32, %v535_v12  ;;  %vm659_vm5 = vcmp.lt.s32.totalorder %v638_v62, 3 }
 0x1c1   : > { %v644_v29 = vor.u32 %v643_v22, %v642_v11  ;;  %v647_v31 = vor.u32 %v646_v23, %v645_v15  ;;  %v650_v32 = vor.u32 %v649_v24, %v648_v17  ;;  %vm660_vm6 = vcmp.lt.s32.totalorder %v638_v62, 4 }
 0x1c2   : > { %v653_v37 = vor.u32 %v652_v26, %v651_v19  ;;  %v656_v39 = vor.u32 %v655_v28, %v654_v21  ;;  %v538_v49 = vshll.u32 %v3251_v10, %v535_v12  ;;  %v539_v52 = vshrl.u32 %v3252_v14, %v536_v34 }
 0x1c3   : > { %v661_v40 = vsel %vm657_vm3, %v641_v25, %v644_v29  ;;  %v662_v41 = vsel %vm660_vm6, %v650_v32, 2102212464  ;;  %v665_v42 = vsel %vm657_vm3, %v644_v29, %v647_v31  ;;  %v669_v44 = vsel %vm657_vm3, %v647_v31, %v650_v32  ;;  %v3707_v29 = vpop.f32.mrb[1].mxu1 }
 0x1c4   : > { %v663_v45 = vsel %vm659_vm5, %v647_v31, %v662_v41  ;;  %v666_v46 = vsel %vm660_vm6, %v653_v37, 920167782  ;;  %v670_v47 = vsel %vm660_vm6, %v656_v39, 1326507024  ;;  %v541_v54 = vshll.u32 %v3252_v14, %v535_v12 }
 0x1c5   : > { %v667_v50 = vsel %vm659_vm5, %v650_v32, %v666_v46  ;;  %v671_v51 = vsel %vm659_vm5, %v653_v37, %v670_v47  ;;  %v664_v55 = vsel %vm658_vm4, %v661_v40, %v663_v45  ;;  %v542_v59 = vshrl.u32 %v3253_v16, %v536_v34 }
 0x1c6   : > { %v668_v56 = vsel %vm658_vm4, %v665_v42, %v667_v50  ;;  %v672_v58 = vsel %vm658_vm4, %v669_v44, %v671_v51  ;;  %v540_v15 = vor.u32 %v539_v52, %v538_v49  ;;  %v544_v19 = vshll.u32 %v3253_v16, %v535_v12 }
 0x1c7   : > { %v3691_v63 = vmul.u32.u64.low %v3659_v0, %v672_v58  ;;  %v3692_v1 = vmul.u32.u64.high %v3659_v0, %v672_v58, %v3691_v63  ;;  %v3695_v9 = vmul.u32.u64.low %v3659_v0, %v668_v56  ;;  %v3696_v11 = vmul.u32.u64.high %v3659_v0, %v668_v56, %v3695_v9 }
 0x1c8   : > { %v543_v17 = vor.u32 %v542_v59, %v541_v54  ;;  %v545_v21 = vshrl.u32 %v3254_v18, %v536_v34  ;;  %v537_v22 = vshrl.u32 %v3251_v10, %v536_v34  ;;  %v547_v62 = vshll.u32 %v3254_v18, %v535_v12 }
 0x1c9   : > { %v548_v23 = vshrl.u32 %v3255_v20, %v536_v34  ;;  %v551_v24 = vshrl.u32 %v3256_v27, %v536_v34  ;;  %v680_v25 = vmul.u32 %v3659_v0, %v664_v55  ;;  %v550_v28 = vshll.u32 %v3255_v20, %v535_v12 }
 0x1ca   : > { %v546_v26 = vor.u32 %v545_v21, %v544_v19  ;;  %vm553_vm7 = vcmp.lt.s32.totalorder %v3661_v2, 1  ;;  %vm682_vm8 = vc.u32 %v3692_v1, %v3695_v9  ;;  %v683_v31 = vadd.s32 1, %v3696_v11 }
 0x1cb   : > { %v549_v32 = vor.u32 %v548_v23, %v547_v62  ;;  %vm554_vm9 = vcmp.lt.s32.totalorder %v3661_v2, 2  ;;  %v552_v37 = vor.u32 %v551_v24, %v550_v28  ;;  %vm555_vm10 = vcmp.lt.s32.totalorder %v3661_v2, 3 }
 0x1cc   : > { %vm556_vm11 = vcmp.lt.s32.totalorder %v3661_v2, 4  ;;  %v561_v0 = vsel %vm553_vm7, %v540_v15, %v543_v17  ;;  %v684_v34 = vsel %vm682_vm8, %v683_v31, %v3696_v11  ;;  %v565_v40 = vsel %vm553_vm7, %v543_v17, %v546_v26 }
 0x1cd   : > { %v558_v12 = vsel %vm556_vm11, %v546_v26, 2102212464  ;;  %v562_v39 = vsel %vm556_vm11, %v549_v32, 920167782  ;;  %v685_v41 = vadd.s32 %v684_v34, %v680_v25  ;;  %v557_v42 = vsel %vm553_vm7, %v537_v22, %v540_v15 }
 0x1ce   : > { %v563_v44 = vsel %vm555_vm10, %v546_v26, %v562_v39  ;;  %v566_v45 = vsel %vm556_vm11, %v552_v37, 1326507024  ;;  %v559_v46 = vsel %vm555_vm10, %v543_v17, %v558_v12  ;;  %vm844_vm12 = vcmp.gt.s32.totalorder %v3668_v13, 0 }
 0x1cf   : > { %v564_v47 = vsel %vm554_vm9, %v561_v0, %v563_v44  ;;  %v567_v49 = vsel %vm555_vm10, %v549_v32, %v566_v45  ;;  %v686_v50 = vadd.s32 536870912, %v685_v41  ;;  %v845_v58 = vsel %vm844_vm12, %v3668_v13, 0 }
 0x1d0   : > { %v568_v51 = vsel %vm554_vm9, %v565_v40, %v567_v49  ;;  %v3721_v52 = vmul.u32.u64.low %v3663_v5, %v564_v47  ;;  %v3722_v54 = vmul.u32.u64.high %v3663_v5, %v564_v47, %v3721_v52  ;;  %v560_v63 = vsel %vm554_vm9, %v557_v42, %v559_v46 }
 0x1d1   : > { %v3726_v55 = vmul.u32.u64.low %v3663_v5, %v568_v51  ;;  %v3727_v56 = vmul.u32.u64.high %v3663_v5, %v568_v51, %v3726_v55  ;;  %v687_v59 = vshrl.u32 %v686_v50, 30  ;;  %v847_v11 = vand.u32 31, %v845_v58 }
 0x1d2   : > { %v3741_v17 = vshll.u32 %v841_v7, 8  ;;  %v3745_v13 = vand.u32 8388607, %v729_v60  ;;  %v579_v2 = vadd.s32 1, %v3722_v54  ;;  %v576_v62 = vmul.u32 %v3663_v5, %v560_v63 }
 0x1d3   : > { %v688_v19 = vshll.u32 %v687_v59, 30  ;;  %v848_v21 = vsub.s32 32, %v847_v11  ;;  %v711_v22 = vsub.s32 4, %v687_v59  ;;  %vm578_vm15 = vc.u32 %v3727_v56, %v3721_v52 }
 0x1d4   : > { %v850_v57 = vshll.u32 %v3251_v10, %v847_v11  ;;  %v681_v7 = vadd.s32 %v3695_v9, %v3692_v1  ;;  %v580_v24 = vsel %vm578_vm15, %v579_v2, %v3722_v54  ;;  %v853_v25 = vshll.u32 %v3252_v14, %v847_v11 }
 0x1d5   : > { %v3755_v23 = vsub.s32 %v685_v41, %v688_v19  ;;  %v581_v26 = vadd.s32 %v580_v24, %v576_v62  ;;  %v3759_v28 = vshrl.u32 %v845_v58, 5  ;;  %v851_v8 = vshrl.u32 %v3252_v14, %v848_v21 }
 0x1d6   : > { %v854_v5 = vshrl.u32 %v3253_v16, %v848_v21  ;;  %v856_v32 = vshll.u32 %v3253_v16, %v847_v11  ;;  %v857_v37 = vshrl.u32 %v3254_v18, %v848_v21  ;;  %v2448_v1 = vadd.s32 4294967169, %v733_v36  ;;  %v1441_v36 = vld [vmem:[#allocation6 + $0x10] sm:$0xff] }
 0x1d7   : > { %v691_v31 = vsub.s32 0, %v3755_v23  ;;  %v712_v9 = vsel %vm627_vm14, %v711_v22, %v687_v59  ;;  %v582_v0 = vadd.s32 536870912, %v581_v26  ;;  %v852_v34 = vor.u32 %v851_v8, %v850_v57  ;;  %v3791_v22 = vpop.f32.mrb[2].mxu1  ;;  %2581 = vmatprep.subr.mxu0 %v1441_v36 }
 0x1d8   : > { %v859_v12 = vshll.u32 %v3254_v18, %v847_v11  ;;  %v855_v40 = vor.u32 %v854_v5, %v853_v25  ;;  %v858_v41 = vor.u32 %v857_v37, %v856_v32  ;;  %v860_v42 = vshrl.u32 %v3255_v20, %v848_v21  ;;  %2582 = vmatpush3.msra.mxu0 %v1441_v36 }
 0x1d9   : > { %v2445_v39 = vmin.u32 %v691_v31, %v3755_v23  ;;  %v3771_v44 = vshrl.u32 %v582_v0, 30  ;;  %v849_v45 = vshrl.u32 %v3251_v10, %v848_v21  ;;  %v862_v46 = vshll.u32 %v3255_v20, %v847_v11  ;;  %2584 = vmatmul.mubr.msk.f32.vlgmr.msra.gmra.mrb[4].mxu0 %vm423_vm0, %v3607_v3 }
 0x1da   : > { %v863_v47 = vshrl.u32 %v3256_v27, %v848_v21  ;;  %v714_v50 = vsel %vm3734_vm13, 0, %v712_v9  ;;  %v861_v51 = vor.u32 %v860_v42, %v859_v12  ;;  %vm865_vm1 = vcmp.lt.s32.totalorder %v3759_v28, 1  ;;  %2586 = vmatprep.mubr.msk.f32.mxu0 %vm423_vm0, %v3610_v4 }
 0x1db   : > { %v693_v49 = vclz %v2445_v39  ;;  %v584_v54 = vshll.u32 %v3771_v44, 30  ;;  %vm867_vm2 = vcmp.lt.s32.totalorder %v3759_v28, 3  ;;  %vm868_vm3 = vcmp.lt.s32.totalorder %v3759_v28, 4 }
 0x1dc   : > { %v864_v55 = vor.u32 %v863_v47, %v862_v46  ;;  %v870_v59 = vsel %vm868_vm3, %v858_v41, 2102212464  ;;  %v873_v63 = vsel %vm865_vm1, %v852_v34, %v855_v40  ;;  %v874_v11 = vsel %vm868_vm3, %v861_v51, 920167782 }
 0x1dd   : > { %v2446_v58 = vadd.s32 4294967294, %v693_v49  ;;  %v3784_v19 = vsub.s32 %v581_v26, %v584_v54  ;;  %vm866_vm4 = vcmp.lt.s32.totalorder %v3759_v28, 2  ;;  %v875_v2 = vsel %vm867_vm2, %v858_v41, %v874_v11  ;;  %2587 = vmatmul.mubr.msk.f32.gmra.mrb[6].mxu0 %vm423_vm0, %v3616_v6 }
 0x1de   : > { %v877_v21 = vsel %vm865_vm1, %v855_v40, %v858_v41  ;;  %v869_v62 = vsel %vm865_vm1, %v849_v45, %v852_v34  ;;  %v871_v57 = vsel %vm867_vm2, %v855_v40, %v870_v59  ;;  %v878_v24 = vsel %vm868_vm3, %v864_v55, 1326507024 }
 0x1df   : > { %vm2447_vm5 = vcmp.lt.s32.totalorder %v2446_v58, 0  ;;  %v587_v26 = vsub.s32 0, %v3784_v19  ;;  %v876_v8 = vsel %vm866_vm4, %v873_v63, %v875_v2  ;;  %v879_v5 = vsel %vm867_vm2, %v861_v51, %v878_v24 }
 0x1e0   : > { %v696_v25 = vsel %vm2447_vm5, 0, %v2446_v58  ;;  %v880_v9 = vsel %vm866_vm4, %v877_v21, %v879_v5  ;;  %v739_v39 = vadd.s32 1, %v2448_v1  ;;  %v718_v45 = vadd.s32 3, %v714_v50 }
 0x1e1   : > { %v697_v31 = vsub.s32 32, %v696_v25  ;;  %v698_v32 = vshll.u32 %v3755_v23, %v696_v25  ;;  %v701_v37 = vsub.s32 4294967266, %v696_v25  ;;  %v2441_v0 = vmin.u32 %v587_v26, %v3784_v19 }
 0x1e2   : > { %v3809_v34 = vmul.u32.u64.low %v3741_v17, %v880_v9  ;;  %v3810_v12 = vmul.u32.u64.high %v3741_v17, %v880_v9, %v3809_v34  ;;  %v3815_v23 = vmul.u32.u64.low %v3741_v17, %v876_v8  ;;  %v3816_v42 = vmul.u32.u64.high %v3741_v17, %v876_v8, %v3815_v23 }
 0x1e3   : > { %v699_v40 = vshrl.u32 %v681_v7, %v697_v31  ;;  %v702_v41 = vadd.s32 127, %v701_v37  ;;  %v589_v46 = vclz %v2441_v0  ;;  %vm740_vm6 = vcmp.gt.s32.totalorder %v739_v39, 0 }
 0x1e4   : > { %v872_v49 = vsel %vm866_vm4, %v869_v62, %v871_v57  ;;  %v741_v51 = vsel %vm740_vm6, %v739_v39, 0  ;;  %vm890_vm7 = vc.u32 %v3810_v12, %v3815_v23  ;;  %v737_v7 = vor.u32 8388608, %v3745_v13 }
 0x1e5   : > { %v700_v3 = vor.u32 %v699_v40, %v698_v32  ;;  %v703_v47 = vshll.u32 %v702_v41, 23  ;;  %v2442_v4 = vadd.s32 4294967294, %v589_v46  ;;  %v3826_v1 = vshrl.u32 %v741_v51, 5 }
 0x1e6   : > { %v577_v54 = vadd.s32 %v3721_v52, %v3727_v56  ;;  %v891_v55 = vadd.s32 1, %v3816_v42  ;;  %v743_v28 = vand.u32 31, %v741_v51  ;;  %v3831_v59 = vand.u32 3, %v718_v45 }
 0x1e7   : > { %v704_v50 = vor.u32 4788187, %v703_v47  ;;  %v707_v58 = vcvt.s32.f32 %v700_v3  ;;  %vm2443_vm8 = vcmp.lt.s32.totalorder %v2442_v4, 0  ;;  %v888_v6 = vmul.u32 %v3741_v17, %v872_v49 }
 0x1e8   : > { %v592_v11 = vsel %vm2443_vm8, 0, %v2442_v4  ;;  %v892_v2 = vsel %vm890_vm7, %v891_v55, %v3816_v42  ;;  %v744_v21 = vsub.s32 32, %v743_v28  ;;  %vm761_vm0 = vcmp.lt.s32.totalorder %v3826_v1, 1  ;;  %v3861_v55 = vpop.f32.mrb[3].mxu1 }
 0x1e9   : > { %v705_v63 = vand.u32 2147483647, %v704_v50  ;;  %v593_v36 = vsub.s32 32, %v592_v11  ;;  %v597_v62 = vsub.s32 4294967266, %v592_v11  ;;  %v893_v57 = vadd.s32 %v892_v2, %v888_v6 }
 0x1ea   : > { %v594_v56 = vshll.u32 %v3784_v19, %v592_v11  ;;  %v746_v24 = vshll.u32 %v3251_v10, %v743_v28  ;;  %v747_v25 = vshrl.u32 %v3252_v14, %v744_v21  ;;  %v749_v5 = vshll.u32 %v3252_v14, %v743_v28 }
 0x1eb   : > { %v708_v52 = vmul.f32 %v707_v58, %v705_v63  ;;  %v595_v26 = vshrl.u32 %v577_v54, %v593_v36  ;;  %v598_v8 = vadd.s32 127, %v597_v62  ;;  %v894_v17 = vadd.s32 536870912, %v893_v57 }
 0x1ec   : > { %v748_v32 = vor.u32 %v747_v25, %v746_v24  ;;  %v750_v37 = vshrl.u32 %v3253_v16, %v744_v21  ;;  %v752_v9 = vshll.u32 %v3253_v16, %v743_v28  ;;  %v753_v19 = vshrl.u32 %v3254_v18, %v744_v21 }
 0x1ed   : > { %v709_v31 = vxor.u32 2147483648, %v708_v52  ;;  %v596_v0 = vor.u32 %v595_v26, %v594_v56  ;;  %v599_v34 = vshll.u32 %v598_v8, 23  ;;  %v3842_v39 = vshrl.u32 %v894_v17, 30 }
 0x1ee   : > { %vm523_vm9 = vcmp.lt.s32.totalorder %v3634_v35, 0  ;;  %v751_v41 = vor.u32 %v750_v37, %v749_v5  ;;  %v755_v42 = vshll.u32 %v3254_v18, %v743_v28  ;;  %v756_v45 = vshrl.u32 %v3255_v20, %v744_v21 }
 0x1ef   : > { %v710_v40 = vsel %vm627_vm14, %v709_v31, %v708_v52  ;;  %vm3855_vm10 = vcmp.le.f32.partialorder %v521_v38, 0.7853982  ;;  %v600_v47 = vor.u32 4788187, %v599_v34  ;;  %v603_v49 = vcvt.s32.f32 %v596_v0 }
 0x1f0   : > { %v713_v46 = vsel %vm3734_vm13, %v3631_v33, %v710_v40  ;;  %v896_v51 = vshll.u32 %v3842_v39, 30  ;;  %v754_v4 = vor.u32 %v753_v19, %v752_v9  ;;  %v757_v50 = vor.u32 %v756_v45, %v755_v42 }
 0x1f1   : > { %2920 = vcosq.f32 %v713_v46  ;;  %v758_v54 = vshll.u32 %v3255_v20, %v743_v28  ;;  %v601_v15 = vand.u32 2147483647, %v600_v47  ;;  %v759_v38 = vshrl.u32 %v3256_v27, %v744_v21 }
 0x1f2   : > { %2922 = vsinq.f32 %v713_v46  ;;  %v3863_v58 = vsub.s32 %v893_v57, %v896_v51  ;;  %v745_v6 = vshrl.u32 %v3251_v10, %v744_v21  ;;  %vm764_vm11 = vcmp.lt.s32.totalorder %v3826_v1, 4 }
 0x1f3   : > { %v769_v63 = vsel %vm761_vm0, %v748_v32, %v751_v41  ;;  %v607_v11 = vsub.s32 4, %v3771_v44  ;;  %v604_v2 = vmul.f32 %v603_v49, %v601_v15  ;;  %v760_v36 = vor.u32 %v759_v38, %v758_v54 }
 0x1f4   : > { %v899_v28 = vsub.s32 0, %v3863_v58  ;;  %v766_v62 = vsel %vm764_vm11, %v754_v4, 2102212464  ;;  %vm762_vm12 = vcmp.lt.s32.totalorder %v3826_v1, 2  ;;  %vm763_vm13 = vcmp.lt.s32.totalorder %v3826_v1, 3 }
 0x1f5   : > { %v770_v21 = vsel %vm764_vm11, %v757_v50, 920167782  ;;  %v777_v57 = vshll.u32 %v737_v7, 8  ;;  %v605_v52 = vxor.u32 2147483648, %v604_v2  ;;  %v773_v25 = vsel %vm761_vm0, %v751_v41, %v754_v4 }
 0x1f6   : > { %v2453_v56 = vmin.u32 %v899_v28, %v3863_v58  ;;  %v771_v24 = vsel %vm763_vm13, %v754_v4, %v770_v21  ;;  %v765_v26 = vsel %vm761_vm0, %v745_v6, %v748_v32  ;;  %v767_v8 = vsel %vm763_vm13, %v751_v41, %v766_v62 }
 0x1f7   : > { %v772_v17 = vsel %vm762_vm12, %v769_v63, %v771_v24  ;;  %v774_v5 = vsel %vm764_vm11, %v760_v36, 1326507024  ;;  %v606_v13 = vsel %vm523_vm9, %v605_v52, %v604_v2  ;;  %v608_v37 = vsel %vm523_vm9, %v607_v11, %v3771_v44 }
 0x1f8   : > { %v901_v7 = vclz %v2453_v56  ;;  %v775_v31 = vsel %vm763_vm13, %v757_v50, %v774_v5  ;;  %v609_v32 = vsel %vm3855_vm10, %v3634_v35, %v606_v13  ;;  %v610_v44 = vsel %vm3855_vm10, 0, %v608_v37  ;;  %v3922_v13 = vld [vmem:[%s3593_s11] ss:$0 sm:$0xff] }
 0x1f9   : > { %v776_v9 = vsel %vm762_vm12, %v773_v25, %v775_v31  ;;  %v3899_v0 = vmul.u32.u64.low %v777_v57, %v772_v17  ;;  %v3900_v34 = vmul.u32.u64.high %v777_v57, %v772_v17, %v3899_v0  ;;  %2924 = vcosq.f32 %v609_v32 }
 0x1fa   : > { %v2454_v19 = vadd.s32 4294967294, %v901_v7  ;;  %v3903_v40 = vmul.u32.u64.low %v777_v57, %v776_v9  ;;  %v3904_v41 = vmul.u32.u64.high %v777_v57, %v776_v9, %v3903_v40  ;;  %2926 = vsinq.f32 %v609_v32 }
 0x1fb   : > { %v2921_v42 = vpop.eup %2920  ;;  %v768_v46 = vsel %vm762_vm12, %v765_v26, %v767_v8  ;;  %v787_v51 = vadd.s32 1, %v3900_v34  ;;  %v614_v50 = vadd.s32 3, %v610_v44  ;;  %vm724_vm15 = vcmp.eq.s32.totalorder %v3831_v59, 2 }
 0x1fc   : > { %v2923_v45 = vpop.eup %2922  ;;  %vm2455_vm14 = vcmp.lt.s32.totalorder %v2454_v19, 0  ;;  %v725_v47 = vxor.u32 2147483648, %v2921_v42  ;;  %v784_v54 = vmul.u32 %v777_v57, %v768_v46  ;;  %vm786_vm1 = vc.u32 %v3904_v41, %v3899_v0 }
 0x1fd   : > { %v904_v49 = vsel %vm2455_vm14, 0, %v2454_v19  ;;  %v722_v15 = vxor.u32 2147483648, %v2923_v45  ;;  %v788_v63 = vsel %vm786_vm1, %v787_v51, %v3900_v34  ;;  %vm721_vm2 = vcmp.eq.s32.totalorder %v3831_v59, 0 }
 0x1fe   : > { %v909_v4 = vsub.s32 4294967266, %v904_v49  ;;  %v726_v3 = vsel %vm724_vm15, %v725_v47, %v2923_v45  ;;  %v905_v38 = vsub.s32 32, %v904_v49  ;;  %vm717_vm3 = vweird.f32 %v3631_v33 }
 0x1ff   : > { %v789_v1 = vadd.s32 %v788_v63, %v784_v54  ;;  %vm720_vm4 = vcmp.lt.s32.totalorder %v3831_v59, 2  ;;  %v723_v11 = vsel %vm721_vm2, %v2921_v42, %v722_v15  ;;  %v889_v2 = vadd.s32 %v3815_v23, %v3810_v12 }
 0x200   : > { %v910_v6 = vadd.s32 127, %v909_v4  ;;  %v615_v36 = vand.u32 3, %v614_v50  ;;  %v727_v62 = vsel %vm720_vm4, %v723_v11, %v726_v3  ;;  %v906_v33 = vshll.u32 %v3863_v58, %v904_v49  ;;  %v2071_v3 = vld [vmem:[#allocation8 + $0x98] sm:$0xff] }
 0x201   : > { %v790_v21 = vadd.s32 536870912, %v789_v1  ;;  %v728_v57 = vsel %vm717_vm3, nan, %v727_v62  ;;  %v907_v56 = vshrl.u32 %v889_v2, %v905_v38  ;;  %vm613_vm8 = vweird.f32 %v3634_v35  ;;  %v2068_v2 = vld [vmem:[#allocation8 + $0x80] sm:$0xff] }
 0x202   : > { %v911_v28 = vshll.u32 %v910_v6, 23  ;;  %vm620_vm5 = vcmp.eq.s32.totalorder %v615_v36, 2  ;;  %vm617_vm6 = vcmp.eq.s32.totalorder %v615_v36, 0  ;;  %vm616_vm7 = vcmp.lt.s32.totalorder %v615_v36, 2 }
 0x203   : > { %v2925_v52 = vpop.eup %2924  ;;  %v791_v25 = vshrl.u32 %v790_v21, 30  ;;  %v908_v12 = vor.u32 %v907_v56, %v906_v33  ;;  %v1951_v19 = vmul.f32 %v3922_v13, %v728_v57  ;;  %vm835_vm9 = vcmp.lt.s32.totalorder %v3643_v43, 0 }
 0x204   : > { %v2927_v24 = vpop.eup %2926  ;;  %v621_v26 = vxor.u32 2147483648, %v2925_v52  ;;  %v912_v8 = vor.u32 4788187, %v911_v28  ;;  %v785_v35 = vadd.s32 %v3899_v0, %v3904_v41  ;;  %vm3934_vm10 = vcmp.le.f32.partialorder %v833_v48, 0.7853982  ;;  %v2069_v28 = vld [vmem:[#allocation8 + $0x88] sm:$0xff] }
 0x205   : > { %v618_v17 = vxor.u32 2147483648, %v2927_v24  ;;  %v792_v59 = vshll.u32 %v791_v25, 30  ;;  %v915_v34 = vcvt.s32.f32 %v908_v12  ;;  %v919_v63 = vsub.s32 4, %v3842_v39 }
 0x206   : > { %v622_v5 = vsel %vm620_vm5, %v621_v26, %v2927_v24  ;;  %v913_v37 = vand.u32 2147483647, %v912_v8  ;;  %v815_v48 = vsub.s32 4, %v791_v25  ;;  %v2708_v21 = vpack.c.bf16 %v2069_v28, %v2068_v2  ;;  %v2076_v28 = vld [vmem:[#allocation8 + $0xc0] sm:$0xff] }
 0x207   : > { %v619_v23 = vsel %vm617_vm6, %v2925_v52, %v618_v17  ;;  %v793_v7 = vsub.s32 %v789_v1, %v792_v59  ;;  %v920_v62 = vsel %vm835_vm9, %v919_v63, %v3842_v39  ;;  %vm731_vm11 = vcmp.lt.s32.totalorder %v3650_v53, 0  ;;  %v2075_v63 = vld [vmem:[#allocation8 + $0xb8] sm:$0xff] }
 0x208   : > { %v623_v31 = vsel %vm616_vm7, %v619_v23, %v622_v5  ;;  %v916_v42 = vmul.f32 %v915_v34, %v913_v37  ;;  %v922_v52 = vsel %vm3934_vm10, 0, %v920_v62  ;;  %2709 = vmatprep.subr.bf16.mxu0 %v2708_v21  ;;  %vm730_vm12 = vcmp.le.f32.partialorder %v729_v60, 0.7853982 }
 0x209   : > { %v624_v32 = vsel %vm613_vm8, nan, %v623_v31  ;;  %v795_v9 = vsub.s32 0, %v793_v7  ;;  %v816_v24 = vsel %vm731_vm11, %v815_v48, %v791_v25  ;;  %2711 = vmatpush3.bf16.msra.mxu0 %v2708_v21  ;;  %v926_v33 = vadd.s32 3, %v922_v52 }
 0x20a   : > { %v1950_v58 = vmul.f32 %v3922_v13, %v624_v32  ;;  %v917_v46 = vxor.u32 2147483648, %v916_v42  ;;  %v818_v39 = vsel %vm730_vm12, 0, %v816_v24  ;;  %v3953_v25 = vadd.f32 %v3657_v61, %v3628_v30 }
 0x20b   : > { %v2449_v40 = vmin.u32 %v795_v9, %v793_v7  ;;  %v822_v59 = vadd.s32 3, %v818_v39  ;;  %v927_v5 = vand.u32 3, %v926_v33  ;;  %vm925_vm4 = vweird.f32 %v3643_v43  ;;  %v2079_v33 = vld [vmem:[#allocation8 + $0xd8] sm:$0xff] }
 0x20c   : > { %2621 = vmatprep.mubr.f32.mxu1 %v1950_v58  ;;  %v918_v4 = vsel %vm835_vm9, %v917_v46, %v916_v42  ;;  %vm821_vm5 = vweird.f32 %v3650_v53  ;;  %v1128_v62 = vand.u32 2147483647, %v3953_v25 }
 0x20d   : > { %2622 = vmatmul.mubr.f32.vlgmr.msra.gmra.mrb[4].mxu1 %v1951_v19  ;;  %v797_v44 = vclz %v2449_v40  ;;  %v921_v38 = vsel %vm3934_vm10, %v3643_v43, %v918_v4  ;;  %vm929_vm13 = vcmp.eq.s32.totalorder %v927_v5, 0  ;;  %vm932_vm14 = vcmp.eq.s32.totalorder %v927_v5, 2 }
 0x20e   : > { %2928 = vcosq.f32 %v921_v38  ;;  %vm928_vm15 = vcmp.lt.s32.totalorder %v927_v5, 2  ;;  %v1131_v40 = vand.u32 2139095040, %v3953_v25 }
 0x20f   : > { %v2450_v45 = vadd.s32 4294967294, %v797_v44  ;;  %2930 = vsinq.f32 %v921_v38  ;;  %v2073_v38 = vld [vmem:[#allocation8 + $0xa8] sm:$0xff] }
 0x211   : > { %vm2451_vm0 = vcmp.lt.s32.totalorder %v2450_v45, 0 }
 0x212   : > { %v800_v47 = vsel %vm2451_vm0, 0, %v2450_v45  ;;  %v3960_v45 = vadd.f32 %v3628_v30, %v3707_v29  ;;  %v2072_v29 = vld [vmem:[#allocation8 + $0xa0] sm:$0xff] }
 0x213   : > { %v801_v49 = vsub.s32 32, %v800_v47  ;;  %v805_v51 = vsub.s32 4294967266, %v800_v47  ;;  %v802_v50 = vshll.u32 %v793_v7, %v800_v47  ;;  %v823_v7 = vand.u32 3, %v822_v59 }
 0x215   : > { %v803_v54 = vshrl.u32 %v785_v35, %v801_v49  ;;  %v806_v15 = vadd.s32 127, %v805_v51  ;;  %vm828_vm1 = vcmp.eq.s32.totalorder %v823_v7, 2  ;;  %vm825_vm2 = vcmp.eq.s32.totalorder %v823_v7, 0 }
 0x216   : > { %vm824_vm3 = vcmp.lt.s32.totalorder %v823_v7, 2  ;;  %v1132_v35 = vshrl.u32 %v1131_v40, 23  ;;  %v1027_v51 = vand.u32 2139095040, %v3960_v45 }
 0x217   : > { %v804_v6 = vor.u32 %v803_v54, %v802_v50  ;;  %v807_v0 = vshll.u32 %v806_v15, 23  ;;  %v2070_v15 = vld [vmem:[#allocation8 + $0x90] sm:$0xff] }
 0x218   : > { %v2929_v8 = vpop.eup %2928  ;;  %v2464_v4 = vadd.s32 4294967169, %v1132_v35  ;;  %v1028_v43 = vshrl.u32 %v1027_v51, 23 }
 0x219   : > { %v808_v41 = vor.u32 4788187, %v807_v0  ;;  %v811_v11 = vcvt.s32.f32 %v804_v6  ;;  %v2931_v17 = vpop.eup %2930  ;;  %v933_v23 = vxor.u32 2147483648, %v2929_v8  ;;  %v2712_v6 = vpack.c.bf16 %v2071_v3, %v2070_v15 }
 0x21a   : > { %v930_v12 = vxor.u32 2147483648, %v2931_v17  ;;  %v1138_v50 = vadd.s32 1, %v2464_v4  ;;  %v2080_v4 = vld [vmem:[#allocation8 + $0xe0] sm:$0xff] }
 0x21b   : > { %v809_v1 = vand.u32 2147483647, %v808_v41  ;;  %v934_v60 = vsel %vm932_vm14, %v933_v23, %v2931_v17  ;;  %v2716_v41 = vpack.c.bf16 %v2073_v38, %v2072_v29  ;;  %2713 = vmatprep.subr.bf16.mxu0 %v2712_v6 }
 0x21c   : > { %v931_v31 = vsel %vm929_vm13, %v2929_v8, %v930_v12  ;;  %vm1139_vm6 = vcmp.gt.s32.totalorder %v1138_v50, 0  ;;  %2715 = vmatpush3.bf16.msra.mxu0 %v2712_v6 }
 0x21d   : > { %v812_v36 = vmul.f32 %v811_v11, %v809_v1  ;;  %v935_v34 = vsel %vm928_vm15, %v931_v31, %v934_v60  ;;  %v1140_v30 = vsel %vm1139_vm6, %v1138_v50, 0  ;;  %2717 = vmatprep.subr.bf16.mxu0 %v2716_v41  ;;  %v1135_v60 = vand.u32 8388607, %v1128_v62 }
 0x21e   : > { %v936_v61 = vsel %vm925_vm4, nan, %v935_v34  ;;  %v1142_v0 = vand.u32 31, %v1140_v30  ;;  %v3974_v8 = vshrl.u32 %v1140_v30, 5 }
 0x21f   : > { %v813_v57 = vxor.u32 2147483648, %v812_v36  ;;  %v1953_v49 = vmul.f32 %v3922_v13, %v936_v61  ;;  %v1136_v3 = vor.u32 8388608, %v1135_v60 }
 0x220   : > { %v3965_v2 = vsub.s32 32, %v1142_v0  ;;  %2719 = vmatpush3.bf16.msra.mxu0 %v2716_v41  ;;  %v1145_v39 = vshll.u32 %v3251_v10, %v1142_v0  ;;  %v1148_v59 = vshll.u32 %v3252_v14, %v1142_v0  ;;  %v1151_v12 = vshll.u32 %v3253_v16, %v1142_v0 }
 0x221   : > { %v814_v56 = vsel %vm731_vm11, %v813_v57, %v812_v36  ;;  %v2077_v36 = vld [vmem:[#allocation8 + $0xc8] sm:$0xff]  ;;  %v1154_v57 = vshll.u32 %v3254_v18, %v1142_v0  ;;  %vm1160_vm8 = vcmp.lt.s32.totalorder %v3974_v8, 1  ;;  %vm1163_vm0 = vcmp.lt.s32.totalorder %v3974_v8, 4 }
 0x222   : > { %v817_v26 = vsel %vm730_vm12, %v3650_v53, %v814_v56  ;;  %v2460_v53 = vadd.s32 4294967169, %v1028_v43  ;;  %v2724_v21 = vpack.c.bf16 %v2077_v36, %v2076_v28  ;;  %v1155_v52 = vshrl.u32 %v3255_v20, %v3965_v2  ;;  %v2081_v43 = vld [vmem:[#allocation8 + $0xe8] sm:$0xff]  ;;  %v4033_v36 = vld [vmem:[#allocation11] ss:$0 sm:$0xff] }
 0x223   : > { %2932 = vcosq.f32 %v817_v26  ;;  %v1157_v56 = vshll.u32 %v3255_v20, %v1142_v0  ;;  %v1158_v24 = vshrl.u32 %v3256_v27, %v3965_v2  ;;  %v1146_v17 = vshrl.u32 %v3252_v14, %v3965_v2 }
 0x224   : > { %2934 = vsinq.f32 %v817_v26  ;;  %v1034_v54 = vadd.s32 1, %v2460_v53  ;;  %v2078_v26 = vld [vmem:[#allocation8 + $0xd0] sm:$0xff]  ;;  %v1149_v5 = vshrl.u32 %v3253_v16, %v3965_v2  ;;  %v1152_v23 = vshrl.u32 %v3254_v18, %v3965_v2 }
 0x225   : > { %v2728_v31 = vpack.c.bf16 %v2079_v33, %v2078_v26  ;;  %vm1162_vm9 = vcmp.lt.s32.totalorder %v3974_v8, 3  ;;  %vm1161_vm10 = vcmp.lt.s32.totalorder %v3974_v8, 2  ;;  %v2732_v6 = vpack.c.bf16 %v2081_v43, %v2080_v4 }
 0x226   : > { %vm1035_vm7 = vcmp.gt.s32.totalorder %v1034_v54, 0  ;;  %v3994_v34 = vor.u32 %v1149_v5, %v1148_v59  ;;  %v1144_v5 = vshrl.u32 %v3251_v10, %v3965_v2  ;;  %v2083_v2 = vld [vmem:[#allocation8 + $0xf8] sm:$0xff] }
 0x227   : > { %v1036_v1 = vsel %vm1035_vm7, %v1034_v54, 0 }
 0x228   : > { %v1038_v48 = vand.u32 31, %v1036_v1 }
 0x22a   : > { %v3985_v7 = vsub.s32 32, %v1038_v48  ;;  %v1050_v40 = vshll.u32 %v3254_v18, %v1038_v48  ;;  %v1053_v61 = vshll.u32 %v3255_v20, %v1038_v48  ;;  %v1044_v51 = vshll.u32 %v3252_v14, %v1038_v48 }
 0x22b   : > { %v1047_v54 = vshll.u32 %v3253_v16, %v1038_v48 }
 0x22c   : > { %v1042_v50 = vshrl.u32 %v3252_v14, %v3985_v7  ;;  %v1045_v53 = vshrl.u32 %v3253_v16, %v3985_v7  ;;  %v1048_v15 = vshrl.u32 %v3254_v18, %v3985_v7  ;;  %v1040_v43 = vshrl.u32 %v3251_v10, %v3985_v7 }
 0x22d   : > { %v2933_v37 = vpop.eup %2932 }
 0x22e   : > { %v2935_v32 = vpop.eup %2934  ;;  %v829_v9 = vxor.u32 2147483648, %v2933_v37  ;;  %v1049_v28 = vor.u32 %v1048_v15, %v1047_v54 }
 0x22f   : > { %v826_v58 = vxor.u32 2147483648, %v2935_v32 }
 0x230   : > { %v830_v19 = vsel %vm828_vm1, %v829_v9, %v2935_v32  ;;  %v1159_v32 = vor.u32 %v1158_v24, %v1157_v56  ;;  %v3989_v9 = vor.u32 %v1146_v17, %v1145_v39 }
 0x231   : > { %v827_v42 = vsel %vm825_vm2, %v2933_v37, %v826_v58  ;;  %v1156_v37 = vor.u32 %v1155_v52, %v1154_v57  ;;  %v1024_v58 = vand.u32 2147483647, %v3960_v45  ;;  %v1176_v57 = vshll.u32 %v1136_v3, 8 }
 0x232   : > { %v831_v44 = vsel %vm824_vm3, %v827_v42, %v830_v19  ;;  %v1153_v19 = vor.u32 %v1152_v23, %v1151_v12  ;;  %v1051_v42 = vshrl.u32 %v3255_v20, %v3985_v7  ;;  %v1173_v35 = vsel %vm1163_vm0, %v1159_v32, 1326507024 }
 0x233   : > { %v832_v46 = vsel %vm821_vm5, nan, %v831_v44  ;;  %v4000_v44 = vshrl.u32 %v1036_v1, 5  ;;  %v1031_v29 = vand.u32 8388607, %v1024_v58  ;;  %v1168_v0 = vsel %vm1160_vm8, %v3989_v9, %v3994_v34 }
 0x234   : > { %v1952_v47 = vmul.f32 %v3922_v13, %v832_v46  ;;  %v2074_v13 = vld [vmem:[#allocation8 + $0xb0] sm:$0xff]  ;;  %v1054_v46 = vshrl.u32 %v3256_v27, %v3985_v7  ;;  %v1052_v30 = vor.u32 %v1051_v42, %v1050_v40  ;;  %v1165_v40 = vsel %vm1163_vm0, %v1153_v19, 2102212464 }
 0x235   : > { %v2720_v11 = vpack.c.bf16 %v2075_v63, %v2074_v13  ;;  %vm1059_vm11 = vcmp.lt.s32.totalorder %v4000_v44, 4  ;;  %v1172_v13 = vsel %vm1160_vm8, %v3994_v34, %v1153_v19  ;;  %v1174_v63 = vsel %vm1162_vm9, %v1156_v37, %v1173_v35 }
 0x236   : > { %2624 = vmatprep.mubr.f32.mxu1 %v1952_v47  ;;  %v1169_v47 = vsel %vm1163_vm0, %v1156_v37, 920167782  ;;  %v1055_v38 = vor.u32 %v1054_v46, %v1053_v61  ;;  %vm1056_vm12 = vcmp.lt.s32.totalorder %v4000_v44, 1  ;;  %vm1058_vm13 = vcmp.lt.s32.totalorder %v4000_v44, 3  ;;  %v2082_v46 = vld [vmem:[#allocation8 + $0xf0] sm:$0xff] }
 0x237   : > { %2625 = vmatmul.mubr.f32.gmra.mrb[6].mxu1 %v1953_v49  ;;  %2721 = vmatprep.subr.bf16.mxu0 %v2720_v11  ;;  %v1041_v49 = vshll.u32 %v3251_v10, %v1038_v48  ;;  %v1170_v41 = vsel %vm1162_vm9, %v1153_v19, %v1169_v47  ;;  %v4037_v48 = vadd.f32 %v4033_v36, %v3791_v22  ;;  %v1032_v52 = vor.u32 8388608, %v1031_v29 }
 0x238   : > { %2723 = vmatpush3.bf16.msra.mxu0 %v2720_v11  ;;  %v1046_v11 = vor.u32 %v1045_v53, %v1044_v51  ;;  %v1069_v56 = vsel %vm1059_vm11, %v1055_v38, 1326507024  ;;  %v1171_v24 = vsel %vm1161_vm10, %v1168_v0, %v1170_v41  ;;  %v1175_v22 = vsel %vm1161_vm10, %v1172_v13, %v1174_v63 }
 0x239   : > { %2725 = vmatprep.subr.bf16.mxu0 %v2724_v21  ;;  %v1043_v1 = vor.u32 %v1042_v50, %v1041_v49  ;;  %vm1057_vm14 = vcmp.lt.s32.totalorder %v4000_v44, 2  ;;  %v1339_v39 = vand.u32 2139095040, %v4037_v48  ;;  %v1070_v59 = vsel %vm1058_vm13, %v1052_v30, %v1069_v56 }
 0x23a   : > { %v1068_v17 = vsel %vm1056_vm12, %v1046_v11, %v1049_v28  ;;  %v4061_v12 = vmul.u32.u64.low %v1176_v57, %v1171_v24  ;;  %v4062_v23 = vmul.u32.u64.high %v1176_v57, %v1171_v24, %v4061_v12  ;;  %v4076_v47 = vadd.f32 %v4033_v36, %v3861_v55 }
 0x23b   : > { %v1064_v26 = vsel %vm1056_vm12, %v1043_v1, %v1046_v11  ;;  %v4065_v60 = vmul.u32.u64.low %v1176_v57, %v1175_v22  ;;  %v4066_v37 = vmul.u32.u64.high %v1176_v57, %v1175_v22, %v4065_v60  ;;  %v1071_v42 = vsel %vm1057_vm14, %v1068_v17, %v1070_v59 }
 0x23c   : > { %2727 = vmatpush3.bf16.msra.mxu0 %v2724_v21  ;;  %v1065_v21 = vsel %vm1059_vm11, %v1052_v30, 920167782  ;;  %v1340_v61 = vshrl.u32 %v1339_v39, 23  ;;  %v1164_v35 = vsel %vm1160_vm8, %v1144_v5, %v3989_v9  ;;  %v2736_v4 = vpack.c.bf16 %v2083_v2, %v2082_v46 }
 0x23d   : > { %2729 = vmatprep.subr.bf16.mxu0 %v2728_v31  ;;  %v1066_v33 = vsel %vm1058_vm13, %v1049_v28, %v1065_v21  ;;  %v1166_v19 = vsel %vm1162_vm9, %v3994_v34, %v1165_v40  ;;  %v1061_v55 = vsel %vm1059_vm11, %v1049_v28, 2102212464  ;;  %v1235_v9 = vand.u32 2139095040, %v4076_v47 }
 0x23e   : > { %v1067_v32 = vsel %vm1057_vm14, %v1064_v26, %v1066_v33  ;;  %v2472_v54 = vadd.s32 4294967169, %v1340_v61  ;;  %v1167_v15 = vsel %vm1161_vm10, %v1164_v35, %v1166_v19  ;;  %v1186_v3 = vadd.s32 1, %v4062_v23 }
 0x23f   : > { %vm1185_vm15 = vc.u32 %v4066_v37, %v4061_v12  ;;  %v1060_v7 = vsel %vm1056_vm12, %v1040_v43, %v1043_v1  ;;  %v1062_v34 = vsel %vm1058_vm13, %v1046_v11, %v1061_v55  ;;  %v1183_v29 = vmul.u32 %v1176_v57, %v1167_v15 }
 0x240   : > { %2731 = vmatpush3.bf16.msra.mxu0 %v2728_v31  ;;  %v1072_v31 = vshll.u32 %v1032_v52, 8  ;;  %v1346_v30 = vadd.s32 1, %v2472_v54  ;;  %v1236_v38 = vshrl.u32 %v1235_v9, 23  ;;  %v1063_v8 = vsel %vm1057_vm14, %v1060_v7, %v1062_v34 }
 0x241   : > { %2733 = vmatprep.subr.bf16.mxu0 %v2732_v6  ;;  %v1336_v39 = vand.u32 2147483647, %v4037_v48 }
 0x242   : > { %v4081_v49 = vmul.u32.u64.low %v1072_v31, %v1067_v32  ;;  %v4082_v51 = vmul.u32.u64.high %v1072_v31, %v1067_v32, %v4081_v49  ;;  %v4090_v50 = vmul.u32.u64.low %v1072_v31, %v1071_v42  ;;  %v4091_v53 = vmul.u32.u64.high %v1072_v31, %v1071_v42, %v4090_v50 }
 0x243   : > { %vm1347_vm2 = vcmp.gt.s32.totalorder %v1346_v30, 0  ;;  %v1079_v13 = vmul.u32 %v1072_v31, %v1063_v8  ;;  %v2468_v63 = vadd.s32 4294967169, %v1236_v38 }
 0x244   : > { %2735 = vmatpush3.bf16.msra.mxu0 %v2732_v6  ;;  %v1187_v6 = vsel %vm1185_vm15, %v1186_v3, %v4062_v23  ;;  %v1082_v0 = vadd.s32 1, %v4082_v51  ;;  %vm1081_vm1 = vc.u32 %v4091_v53, %v4081_v49  ;;  %v1348_v11 = vsel %vm1347_vm2, %v1346_v30, 0 }
 0x245   : > { %2737 = vmatprep.subr.bf16.mxu0 %v2736_v4  ;;  %v1188_v41 = vadd.s32 %v1187_v6, %v1183_v29  ;;  %v1242_v57 = vadd.s32 1, %v2468_v63  ;;  %v1350_v52 = vand.u32 31, %v1348_v11  ;;  %v4120_v17 = vshrl.u32 %v1348_v11, 5 }
 0x246   : > { %v1083_v1 = vsel %vm1081_vm1, %v1082_v0, %v4082_v51  ;;  %v1232_v3 = vand.u32 2147483647, %v4076_v47  ;;  %vm1130_vm15 = vcmp.lt.s32.totalorder %v3953_v25, 0  ;;  %vm1026_vm1 = vcmp.lt.s32.totalorder %v3960_v45, 0 }
 0x247   : > { %v1189_v28 = vadd.s32 536870912, %v1188_v41  ;;  %v1084_v21 = vadd.s32 %v1083_v1, %v1079_v13  ;;  %vm1243_vm3 = vcmp.gt.s32.totalorder %v1242_v57, 0  ;;  %v4114_v24 = vsub.s32 32, %v1350_v52 }
 0x248   : > { %2739 = vmatpush3.bf16.msra.mxu0 %v2736_v4  ;;  %v1244_v22 = vsel %vm1243_vm3, %v1242_v57, 0  ;;  %v1353_v59 = vshll.u32 %v3251_v10, %v1350_v52  ;;  %v1362_v5 = vshll.u32 %v3254_v18, %v1350_v52  ;;  %v1356_v60 = vshll.u32 %v3252_v14, %v1350_v52 }
 0x249   : > { %v4112_v56 = vshrl.u32 %v1189_v28, 30  ;;  %v1085_v44 = vadd.s32 536870912, %v1084_v21  ;;  %v1363_v23 = vshrl.u32 %v3255_v20, %v4114_v24  ;;  %v1354_v31 = vshrl.u32 %v3252_v14, %v4114_v24 }
 0x24a   : > { %v1357_v32 = vshrl.u32 %v3253_v16, %v4114_v24  ;;  %v1246_v40 = vand.u32 31, %v1244_v22  ;;  %v1365_v42 = vshll.u32 %v3255_v20, %v1350_v52  ;;  %v1366_v61 = vshrl.u32 %v3256_v27, %v4114_v24 }
 0x24b   : > { %v1191_v26 = vshll.u32 %v4112_v56, 30  ;;  %v4117_v33 = vshrl.u32 %v1085_v44, 30  ;;  %v1359_v2 = vshll.u32 %v3253_v16, %v1350_v52  ;;  %v1360_v35 = vshrl.u32 %v3254_v18, %v4114_v24 }
 0x24c   : > { %v1343_v4 = vand.u32 8388607, %v1336_v39  ;;  %v1364_v19 = vor.u32 %v1363_v23, %v1362_v5  ;;  %v4142_v43 = vor.u32 %v1354_v31, %v1353_v59  ;;  %v4144_v50 = vor.u32 %v1357_v32, %v1356_v60 }
 0x24d   : > { %v1087_v46 = vshll.u32 %v4117_v33, 30  ;;  %v4138_v51 = vsub.s32 %v1188_v41, %v1191_v26  ;;  %vm1371_vm4 = vcmp.lt.s32.totalorder %v4120_v17, 4  ;;  %v4147_v55 = vsub.s32 32, %v1246_v40 }
 0x24e   : > { %v1367_v54 = vor.u32 %v1366_v61, %v1365_v42  ;;  %vm1368_vm5 = vcmp.lt.s32.totalorder %v4120_v17, 1  ;;  %v1361_v15 = vor.u32 %v1360_v35, %v1359_v2  ;;  %v1344_v34 = vor.u32 8388608, %v1343_v4 }
 0x24f   : > { %v4150_v9 = vsub.s32 %v1084_v21, %v1087_v46  ;;  %v1194_v7 = vsub.s32 0, %v4138_v51  ;;  %vm1370_vm6 = vcmp.lt.s32.totalorder %v4120_v17, 3  ;;  %v1377_v30 = vsel %vm1371_vm4, %v1364_v19, 920167782 }
 0x250   : > { %vm1369_vm7 = vcmp.lt.s32.totalorder %v4120_v17, 2  ;;  %v1376_v29 = vsel %vm1368_vm5, %v4142_v43, %v4144_v50  ;;  %v1258_v38 = vshll.u32 %v3254_v18, %v1246_v40  ;;  %v1259_v6 = vshrl.u32 %v3255_v20, %v4147_v55 }
 0x251   : > { %v1381_v8 = vsel %vm1371_vm4, %v1367_v54, 1326507024  ;;  %v4167_v0 = vshrl.u32 %v1244_v22, 5  ;;  %v1261_v41 = vshll.u32 %v3255_v20, %v1246_v40  ;;  %v1262_v13 = vshrl.u32 %v3256_v27, %v4147_v55 }
 0x252   : > { %v1090_v63 = vsub.s32 0, %v4150_v9  ;;  %v1378_v1 = vsel %vm1370_vm6, %v1361_v15, %v1377_v30  ;;  %v1249_v11 = vshll.u32 %v3251_v10, %v1246_v40  ;;  %v1252_v28 = vshll.u32 %v3252_v14, %v1246_v40 }
 0x253   : > { %v1250_v21 = vshrl.u32 %v3252_v14, %v4147_v55  ;;  %v1253_v57 = vshrl.u32 %v3253_v16, %v4147_v55  ;;  %v1255_v52 = vshll.u32 %v3253_v16, %v1246_v40  ;;  %v1256_v44 = vshrl.u32 %v3254_v18, %v4147_v55 }
 0x254   : > { %v2465_v22 = vmin.u32 %v1194_v7, %v4138_v51  ;;  %v1380_v26 = vsel %vm1368_vm5, %v4144_v50, %v1361_v15  ;;  %v1382_v59 = vsel %vm1370_vm6, %v1364_v19, %v1381_v8  ;;  %v1260_v5 = vor.u32 %v1259_v6, %v1258_v38 }
 0x255   : > { %v1384_v23 = vshll.u32 %v1344_v34, 8  ;;  %v1239_v31 = vand.u32 8388607, %v1232_v3  ;;  %v1263_v60 = vor.u32 %v1262_v13, %v1261_v41  ;;  %vm1267_vm8 = vcmp.lt.s32.totalorder %v4167_v0, 4 }
 0x256   : > { %v2461_v32 = vmin.u32 %v1090_v63, %v4150_v9  ;;  %v1379_v40 = vsel %vm1369_vm7, %v1376_v29, %v1378_v1  ;;  %v1383_v42 = vsel %vm1369_vm7, %v1380_v26, %v1382_v59  ;;  %v1251_v61 = vor.u32 %v1250_v21, %v1249_v11 }
 0x257   : > { %v1254_v46 = vor.u32 %v1253_v57, %v1252_v28  ;;  %v1257_v2 = vor.u32 %v1256_v44, %v1255_v52  ;;  %v1196_v35 = vclz %v2465_v22  ;;  %vm1264_vm0 = vcmp.lt.s32.totalorder %v4167_v0, 1 }
 0x258   : > { %vm1266_vm9 = vcmp.lt.s32.totalorder %v4167_v0, 3  ;;  %v1273_v4 = vsel %vm1267_vm8, %v1260_v5, 920167782  ;;  %v4202_v19 = vmul.u32.u64.low %v1384_v23, %v1379_v40  ;;  %v4203_v54 = vmul.u32.u64.high %v1384_v23, %v1379_v40, %v4202_v19 }
 0x259   : > { %v1240_v7 = vor.u32 8388608, %v1239_v31  ;;  %v1277_v34 = vsel %vm1267_vm8, %v1263_v60, 1326507024  ;;  %v1092_v30 = vclz %v2461_v32  ;;  %v1352_v29 = vshrl.u32 %v3251_v10, %v4114_v24 }
 0x25a   : > { %v4210_v38 = vmul.u32.u64.low %v1384_v23, %v1383_v42  ;;  %v4211_v6 = vmul.u32.u64.high %v1384_v23, %v1383_v42, %v4210_v38  ;;  %v1373_v8 = vsel %vm1371_vm4, %v1361_v15, 2102212464  ;;  %vm1265_vm10 = vcmp.lt.s32.totalorder %v4167_v0, 2 }
 0x25b   : > { %v1272_v41 = vsel %vm1264_vm0, %v1251_v61, %v1254_v46  ;;  %v1274_v13 = vsel %vm1266_vm9, %v1257_v2, %v1273_v4  ;;  %v2466_v63 = vadd.s32 4294967294, %v1196_v35  ;;  %v1276_v1 = vsel %vm1264_vm0, %v1254_v46, %v1257_v2 }
 0x25c   : > { %v1278_v24 = vsel %vm1266_vm9, %v1260_v5, %v1277_v34  ;;  %v1280_v11 = vshll.u32 %v1240_v7, 8  ;;  %v2462_v28 = vadd.s32 4294967294, %v1092_v30  ;;  %v1372_v15 = vsel %vm1368_vm5, %v1352_v29, %v4142_v43 }
 0x25d   : > { %v1374_v21 = vsel %vm1370_vm6, %v4144_v50, %v1373_v8  ;;  %v1275_v57 = vsel %vm1265_vm10, %v1272_v41, %v1274_v13  ;;  %v1279_v52 = vsel %vm1265_vm10, %v1276_v1, %v1278_v24  ;;  %vm2467_vm11 = vcmp.lt.s32.totalorder %v2466_v63, 0 }
 0x25e   : > { %v1375_v44 = vsel %vm1369_vm7, %v1372_v15, %v1374_v21  ;;  %v1394_v22 = vadd.s32 1, %v4203_v54  ;;  %v4237_v26 = vmul.u32.u64.low %v1280_v11, %v1275_v57  ;;  %v4238_v59 = vmul.u32.u64.high %v1280_v11, %v1275_v57, %v4237_v26 }
 0x25f   : > { %vm2463_vm12 = vcmp.lt.s32.totalorder %v2462_v28, 0  ;;  %v1248_v43 = vshrl.u32 %v3251_v10, %v4147_v55  ;;  %v4243_v50 = vmul.u32.u64.low %v1280_v11, %v1279_v52  ;;  %v4244_v5 = vmul.u32.u64.high %v1280_v11, %v1279_v52, %v4243_v50 }
 0x260   : > { %v1199_v31 = vsel %vm2467_vm11, 0, %v2466_v63  ;;  %vm1393_vm13 = vc.u32 %v4211_v6, %v4202_v19  ;;  %v1269_v17 = vsel %vm1267_vm8, %v1257_v2, 2102212464  ;;  %v1095_v60 = vsel %vm2463_vm12, 0, %v2462_v28 }
 0x261   : > { %v1391_v32 = vmul.u32 %v1384_v23, %v1375_v44  ;;  %v1204_v40 = vsub.s32 4294967266, %v1199_v31  ;;  %v1395_v42 = vsel %vm1393_vm13, %v1394_v22, %v4203_v54  ;;  %v1268_v35 = vsel %vm1264_vm0, %v1248_v43, %v1251_v61 }
 0x262   : > { %v1270_v55 = vsel %vm1266_vm9, %v1254_v46, %v1269_v17  ;;  %v1100_v4 = vsub.s32 4294967266, %v1095_v60  ;;  %v1290_v30 = vadd.s32 1, %v4238_v59  ;;  %v1184_v2 = vadd.s32 %v4061_v12, %v4066_v37 }
 0x263   : > { %v1396_v7 = vadd.s32 %v1395_v42, %v1391_v32  ;;  %v1271_v34 = vsel %vm1265_vm10, %v1268_v35, %v1270_v55  ;;  %v1200_v23 = vsub.s32 32, %v1199_v31  ;;  %v1205_v29 = vadd.s32 127, %v1204_v40 }
 0x264   : > { %vm1289_vm14 = vc.u32 %v4244_v5, %v4237_v26  ;;  %v1080_v61 = vadd.s32 %v4081_v49, %v4091_v53  ;;  %v1096_v54 = vsub.s32 32, %v1095_v60  ;;  %v1101_v46 = vadd.s32 127, %v1100_v4 }
 0x265   : > { %v1287_v38 = vmul.u32 %v1280_v11, %v1271_v34  ;;  %v1397_v8 = vadd.s32 536870912, %v1396_v7  ;;  %v1291_v0 = vsel %vm1289_vm14, %v1290_v30, %v4238_v59  ;;  %v1201_v41 = vshll.u32 %v4138_v51, %v1199_v31 }
 0x266   : > { %v1202_v13 = vshrl.u32 %v1184_v2, %v1200_v23  ;;  %v1206_v63 = vshll.u32 %v1205_v29, 23  ;;  %v1097_v12 = vshll.u32 %v4150_v9, %v1095_v60  ;;  %v1098_v37 = vshrl.u32 %v1080_v61, %v1096_v54 }
 0x267   : > { %v1102_v1 = vshll.u32 %v1101_v46, 23  ;;  %v1292_v24 = vadd.s32 %v1291_v0, %v1287_v38  ;;  %v4267_v28 = vshrl.u32 %v1397_v8, 30  ;;  %vm4293_vm2 = vcmp.le.f32.partialorder %v1128_v62, 0.7853982 }
 0x268   : > { %v1203_v15 = vor.u32 %v1202_v13, %v1201_v41  ;;  %v1207_v21 = vor.u32 4788187, %v1206_v63  ;;  %v1099_v49 = vor.u32 %v1098_v37, %v1097_v12  ;;  %vm4302_vm3 = vcmp.le.f32.partialorder %v1024_v58, 0.7853982 }
 0x269   : > { %v1103_v53 = vor.u32 4788187, %v1102_v1  ;;  %v1293_v57 = vadd.s32 536870912, %v1292_v24  ;;  %v1399_v11 = vshll.u32 %v4267_v28, 30  ;;  %v1214_v1 = vsub.s32 4, %v4112_v56 }
 0x26a   : > { %v1208_v52 = vand.u32 2147483647, %v1207_v21  ;;  %v1210_v44 = vcvt.s32.f32 %v1203_v15  ;;  %v1106_v51 = vcvt.s32.f32 %v1099_v49  ;;  %v1110_v15 = vsub.s32 4, %v4117_v33 }
 0x26b   : > { %v1104_v22 = vand.u32 2147483647, %v1103_v53  ;;  %v4270_v59 = vshrl.u32 %v1293_v57, 30  ;;  %v4272_v43 = vsub.s32 %v1396_v7, %v1399_v11  ;;  %v1392_v23 = vadd.s32 %v4202_v19, %v4211_v6 }
 0x26c   : > { %v1211_v9 = vmul.f32 %v1210_v44, %v1208_v52 }
 0x26d   : > { %v1107_v50 = vmul.f32 %v1106_v51, %v1104_v22  ;;  %v1295_v31 = vshll.u32 %v4270_v59, 30  ;;  %v1402_v60 = vsub.s32 0, %v4272_v43 }
 0x26e   : > { %v1212_v42 = vxor.u32 2147483648, %v1211_v9 }
 0x26f   : > { %v1108_v55 = vxor.u32 2147483648, %v1107_v50  ;;  %v4283_v4 = vsub.s32 %v1292_v24, %v1295_v31  ;;  %v2473_v34 = vmin.u32 %v1402_v60, %v4272_v43 }
 0x270   : > { %v1213_v29 = vsel %vm1130_vm15, %v1212_v42, %v1211_v9 }
 0x271   : > { %v1109_v38 = vsel %vm1026_vm1, %v1108_v55, %v1107_v50  ;;  %v1298_v62 = vsub.s32 0, %v4283_v4  ;;  %v1216_v8 = vsel %vm4293_vm2, %v3953_v25, %v1213_v29  ;;  %v1404_v0 = vclz %v2473_v34 }
 0x272   : > { %v1112_v58 = vsel %vm4302_vm3, %v3960_v45, %v1109_v38  ;;  %2936 = vcosq.f32 %v1216_v8 }
 0x273   : > { %v2469_v63 = vmin.u32 %v1298_v62, %v4283_v4  ;;  %2938 = vsinq.f32 %v1216_v8  ;;  %v2474_v37 = vadd.s32 4294967294, %v1404_v0 }
 0x274   : > { %2940 = vcosq.f32 %v1112_v58 }
 0x275   : > { %2942 = vsinq.f32 %v1112_v58  ;;  %v1300_v44 = vclz %v2469_v63  ;;  %vm2475_vm0 = vcmp.lt.s32.totalorder %v2474_v37, 0 }
 0x2ac   : > { %v2585_v17 = vpop.f32.mrb[4].mxu0 }
 0x2ad   : > { %v4277_v32 = vadd.f32 %v4033_v36, %v2585_v17  ;;  %v4279_v40 = vpop.f32.mrb[5].mxu0 }
 0x2af   : > { %v1634_v35 = vand.u32 2139095040, %v4277_v32  ;;  %v1631_v61 = vand.u32 2147483647, %v4277_v32 }
 0x2b0   : > { %v4285_v7 = vpop.f32.mrb[6].mxu0 }
 0x2b1   : > { %v1635_v30 = vshrl.u32 %v1634_v35, 23  ;;  %v4289_v2 = vpop.f32.mrb[7].mxu0  ;;  %v1638_v13 = vand.u32 8388607, %v1631_v61 }
 0x2b3   : > { %v2484_v54 = vadd.s32 4294967169, %v1635_v30  ;;  %v1639_v21 = vor.u32 8388608, %v1638_v13  ;;  %v2470_v13 = vadd.s32 4294967294, %v1300_v44 }
 0x2b5   : > { %v1641_v41 = vadd.s32 1, %v2484_v54  ;;  %v1679_v35 = vshll.u32 %v1639_v21, 8  ;;  %v1215_v21 = vsel %vm1130_vm15, %v1214_v1, %v4112_v56  ;;  %v1407_v1 = vsel %vm2475_vm0, 0, %v2474_v37 }
 0x2b6   : > { %vm2471_vm9 = vcmp.lt.s32.totalorder %v2470_v13, 0  ;;  %vm1633_vm0 = vcmp.lt.s32.totalorder %v4277_v32, 0 }
 0x2b7   : > { %vm1642_vm4 = vcmp.gt.s32.totalorder %v1641_v41, 0 }
 0x2b8   : > { %v1643_v12 = vsel %vm1642_vm4, %v1641_v41, 0  ;;  %v4331_v41 = vpop.eup %2936 }
 0x2b9   : > { %v1645_v24 = vand.u32 31, %v1643_v12  ;;  %v1644_v49 = vshrl.u32 %v1643_v12, 5  ;;  %v1228_v19 = vxor.u32 2147483648, %v4331_v41 }
 0x2bb   : > { %v1646_v53 = vsub.s32 32, %v1645_v24  ;;  %v1648_v57 = vshll.u32 %v3251_v10, %v1645_v24  ;;  %v1651_v11 = vshll.u32 %v3252_v14, %v1645_v24  ;;  %v1654_v52 = vshll.u32 %v3253_v16, %v1645_v24 }
 0x2bc   : > { %v1657_v22 = vshll.u32 %v3254_v18, %v1645_v24  ;;  %v1660_v51 = vshll.u32 %v3255_v20, %v1645_v24  ;;  %vm1663_vm5 = vcmp.lt.s32.totalorder %v1644_v49, 1  ;;  %vm1666_vm6 = vcmp.lt.s32.totalorder %v1644_v49, 4  ;;  %v4333_v24 = vpop.eup %2938 }
 0x2bd   : > { %v1647_v9 = vshrl.u32 %v3251_v10, %v1646_v53  ;;  %v1649_v50 = vshrl.u32 %v3252_v14, %v1646_v53  ;;  %v1652_v31 = vshrl.u32 %v3253_v16, %v1646_v53  ;;  %v1655_v17 = vshrl.u32 %v3254_v18, %v1646_v53 }
 0x2be   : > { %v1658_v60 = vshrl.u32 %v3255_v20, %v1646_v53  ;;  %v1661_v42 = vshrl.u32 %v3256_v27, %v1646_v53  ;;  %vm1664_vm7 = vcmp.lt.s32.totalorder %v1644_v49, 2  ;;  %vm1665_vm8 = vcmp.lt.s32.totalorder %v1644_v49, 3 }
 0x2bf   : > { %v1650_v55 = vor.u32 %v1649_v50, %v1648_v57  ;;  %v1653_v34 = vor.u32 %v1652_v31, %v1651_v11  ;;  %v1656_v30 = vor.u32 %v1655_v17, %v1654_v52  ;;  %v2941_v11 = vpop.eup %2940  ;;  %v1111_v52 = vsel %vm1026_vm1, %v1110_v15, %v4117_v33 }
 0x2c0   : > { %v1659_v29 = vor.u32 %v1658_v60, %v1657_v22  ;;  %v1662_v54 = vor.u32 %v1661_v42, %v1660_v51  ;;  %v2943_v56 = vpop.eup %2942  ;;  %v1217_v60 = vsel %vm4293_vm2, 0, %v1215_v21  ;;  %v1113_v33 = vsel %vm4302_vm3, 0, %v1111_v52 }
 0x2c1   : > { %v1667_v38 = vsel %vm1663_vm5, %v1647_v9, %v1650_v55  ;;  %v1668_v62 = vsel %vm1666_vm6, %v1656_v30, 2102212464  ;;  %v1671_v8 = vsel %vm1663_vm5, %v1650_v55, %v1653_v34  ;;  %v1675_v0 = vsel %vm1663_vm5, %v1653_v34, %v1656_v30 }
 0x2c2   : > { %v1669_v58 = vsel %vm1665_vm8, %v1653_v34, %v1668_v62  ;;  %v1672_v63 = vsel %vm1666_vm6, %v1659_v29, 920167782  ;;  %v1676_v12 = vsel %vm1666_vm6, %v1662_v54, 1326507024  ;;  %v1412_v42 = vsub.s32 4294967266, %v1407_v1 }
 0x2c3   : > { %v1673_v53 = vsel %vm1665_vm8, %v1656_v30, %v1672_v63  ;;  %v1677_v57 = vsel %vm1665_vm8, %v1659_v29, %v1676_v12  ;;  %v1670_v22 = vsel %vm1664_vm7, %v1667_v38, %v1669_v58  ;;  %v1303_v49 = vsel %vm2471_vm9, 0, %v2470_v13 }
 0x2c4   : > { %v1674_v44 = vsel %vm1664_vm7, %v1671_v8, %v1673_v53  ;;  %v1678_v51 = vsel %vm1664_vm7, %v1675_v0, %v1677_v57  ;;  %v1686_v15 = vmul.u32 %v1679_v35, %v1670_v22  ;;  %v1221_v34 = vadd.s32 3, %v1217_v60 }
 0x2c5   : > { %v4344_v9 = vmul.u32.u64.low %v1679_v35, %v1678_v51  ;;  %v4345_v50 = vmul.u32.u64.high %v1679_v35, %v1678_v51, %v4344_v9  ;;  %v4347_v31 = vmul.u32.u64.low %v1679_v35, %v1674_v44  ;;  %v4348_v17 = vmul.u32.u64.high %v1679_v35, %v1674_v44, %v4347_v31 }
 0x2c6   : > { %v1117_v30 = vadd.s32 3, %v1113_v33  ;;  %v1308_v37 = vsub.s32 4294967266, %v1303_v49  ;;  %v1408_v38 = vsub.s32 32, %v1407_v1  ;;  %v1413_v46 = vadd.s32 127, %v1412_v42  ;;  %v4373_v42 = vld [vmem:[%s3593_s11 + $0x1] ss:$0 sm:$0xff] }
 0x2c7   : > { %vm1688_vm10 = vc.u32 %v4345_v50, %v4347_v31  ;;  %v1689_v55 = vadd.s32 1, %v4348_v17  ;;  %v1222_v35 = vand.u32 3, %v1221_v34  ;;  %v1288_v0 = vadd.s32 %v4237_v26, %v4244_v5 }
 0x2c8   : > { %v1118_v8 = vand.u32 3, %v1117_v30  ;;  %v1304_v13 = vsub.s32 32, %v1303_v49  ;;  %v1309_v58 = vadd.s32 127, %v1308_v37  ;;  %v1409_v12 = vshll.u32 %v4272_v43, %v1407_v1 }
 0x2c9   : > { %v1690_v29 = vsel %vm1688_vm10, %v1689_v55, %v4348_v17  ;;  %v1410_v21 = vshrl.u32 %v1392_v23, %v1408_v38  ;;  %v1414_v53 = vshll.u32 %v1413_v46, 23  ;;  %v1225_v57 = vxor.u32 2147483648, %v4333_v24 }
 0x2ca   : > { %v1691_v54 = vadd.s32 %v1690_v29, %v1686_v15  ;;  %v1121_v6 = vxor.u32 2147483648, %v2943_v56  ;;  %v1124_v52 = vxor.u32 2147483648, %v2941_v11  ;;  %vm1224_vm11 = vcmp.eq.s32.totalorder %v1222_v35, 0 }
 0x2cb   : > { %vm1227_vm12 = vcmp.eq.s32.totalorder %v1222_v35, 2  ;;  %vm1120_vm13 = vcmp.eq.s32.totalorder %v1118_v8, 0  ;;  %vm1123_vm14 = vcmp.eq.s32.totalorder %v1118_v8, 2  ;;  %v1305_v26 = vshll.u32 %v4283_v4, %v1303_v49 }
 0x2cc   : > { %v1692_v62 = vadd.s32 536870912, %v1691_v54  ;;  %v1306_v5 = vshrl.u32 %v1288_v0, %v1304_v13  ;;  %v1310_v44 = vshll.u32 %v1309_v58, 23  ;;  %v1411_v51 = vor.u32 %v1410_v21, %v1409_v12 }
 0x2cd   : > { %v1415_v9 = vor.u32 4788187, %v1414_v53  ;;  %vm1119_vm15 = vcmp.lt.s32.totalorder %v1118_v8, 2  ;;  %v1122_v17 = vsel %vm1120_vm13, %v2941_v11, %v1121_v6  ;;  %v1125_v1 = vsel %vm1123_vm14, %v1124_v52, %v2943_v56 }
 0x2ce   : > { %v4363_v63 = vshrl.u32 %v1692_v62, 30  ;;  %vm1223_vm1 = vcmp.lt.s32.totalorder %v1222_v35, 2  ;;  %v1226_v33 = vsel %vm1224_vm11, %v4331_v41, %v1225_v57  ;;  %v1229_v15 = vsel %vm1227_vm12, %v1228_v19, %v4333_v24 }
 0x2cf   : > { %v1307_v55 = vor.u32 %v1306_v5, %v1305_v26  ;;  %v1311_v34 = vor.u32 4788187, %v1310_v44  ;;  %v1418_v4 = vcvt.s32.f32 %v1411_v51  ;;  %vm1220_vm2 = vweird.f32 %v3953_v25 }
 0x2d0   : > { %v1694_v22 = vshll.u32 %v4363_v63, 30  ;;  %vm1116_vm3 = vweird.f32 %v3960_v45  ;;  %v1126_v29 = vsel %vm1119_vm15, %v1122_v17, %v1125_v1  ;;  %v1416_v11 = vand.u32 2147483647, %v1415_v9 }
 0x2d1   : > { %v1230_v56 = vsel %vm1223_vm1, %v1226_v33, %v1229_v15  ;;  %v1312_v23 = vand.u32 2147483647, %v1311_v34  ;;  %v1314_v38 = vcvt.s32.f32 %v1307_v55  ;;  %v1127_v46 = vsel %vm1116_vm3, nan, %v1126_v29 }
 0x2d2   : > { %v1695_v43 = vsub.s32 %v1691_v54, %v1694_v22  ;;  %v1231_v35 = vsel %vm1220_vm2, nan, %v1230_v56  ;;  %v1419_v0 = vmul.f32 %v1418_v4, %v1416_v11  ;;  %v1687_v45 = vadd.s32 %v4347_v31, %v4345_v50 }
 0x2d3   : > { %v1315_v58 = vmul.f32 %v1314_v38, %v1312_v23  ;;  %vm1338_vm5 = vcmp.lt.s32.totalorder %v4037_v48, 0  ;;  %vm1234_vm6 = vcmp.lt.s32.totalorder %v4076_v47, 0  ;;  %vm4385_vm7 = vcmp.le.f32.partialorder %v1336_v39, 0.7853982 }
 0x2d4   : > { %v1697_v60 = vsub.s32 0, %v1695_v43  ;;  %v1420_v57 = vxor.u32 2147483648, %v1419_v0  ;;  %vm4393_vm8 = vcmp.le.f32.partialorder %v1232_v3, 0.7853982  ;;  %v1318_v17 = vsub.s32 4, %v4270_v59 }
 0x2d5   : > { %v1316_v52 = vxor.u32 2147483648, %v1315_v58  ;;  %vm4409_vm9 = vcmp.le.f32.partialorder %v1631_v61, 0.7853982  ;;  %v1422_v15 = vsub.s32 4, %v4267_v28  ;;  %v1717_v55 = vsub.s32 4, %v4363_v63 }
 0x2d6   : > { %v2485_v30 = vmin.u32 %v1697_v60, %v1695_v43  ;;  %v1421_v31 = vsel %vm1338_vm5, %v1420_v57, %v1419_v0  ;;  %v1319_v34 = vsel %vm1234_vm6, %v1318_v17, %v4270_v59  ;;  %vm1723_vm2 = vweird.f32 %v4277_v32 }
 0x2d7   : > { %v1317_v51 = vsel %vm1234_vm6, %v1316_v52, %v1315_v58  ;;  %v1424_v39 = vsel %vm4385_vm7, %v4037_v48, %v1421_v31  ;;  %v1423_v4 = vsel %vm1338_vm5, %v1422_v15, %v4267_v28  ;;  %v1718_v59 = vsel %vm1633_vm0, %v1717_v55, %v4363_v63 }
 0x2d8   : > { %v1699_v41 = vclz %v2485_v30  ;;  %v1320_v60 = vsel %vm4393_vm8, %v4076_v47, %v1317_v51  ;;  %2944 = vcosq.f32 %v1424_v39  ;;  %v1425_v29 = vsel %vm4385_vm7, 0, %v1423_v4 }
 0x2d9   : > { %2946 = vsinq.f32 %v1424_v39  ;;  %v1720_v56 = vsel %vm4409_vm9, 0, %v1718_v59  ;;  %vm1324_vm5 = vweird.f32 %v4076_v47  ;;  %vm1428_vm6 = vweird.f32 %v4037_v48 }
 0x2da   : > { %v2486_v62 = vadd.s32 4294967294, %v1699_v41  ;;  %2948 = vcosq.f32 %v1320_v60  ;;  %v1429_v41 = vadd.s32 3, %v1425_v29  ;;  %v4446_v17 = vadd.f32 %v4033_v36, %v4279_v40 }
 0x2db   : > { %2950 = vsinq.f32 %v1320_v60 }
 0x2dc   : > { %vm2487_vm4 = vcmp.lt.s32.totalorder %v2486_v62, 0  ;;  %v1530_v47 = vand.u32 2139095040, %v4446_v17 }
 0x2dd   : > { %v1702_v13 = vsel %vm2487_vm4, 0, %v2486_v62 }
 0x2de   : > { %v1703_v12 = vsub.s32 32, %v1702_v13  ;;  %v1704_v21 = vshll.u32 %v1695_v43, %v1702_v13  ;;  %v1707_v53 = vsub.s32 4294967266, %v1702_v13 }
 0x2e0   : > { %v2623_v49 = vpop.f32.mrb[4].mxu1  ;;  %v1705_v19 = vshrl.u32 %v1687_v45, %v1703_v12  ;;  %v1708_v6 = vadd.s32 127, %v1707_v53 }
 0x2e1   : > { %v2050_v37 = vadd.f32 %v2623_v49, %v4373_v42  ;;  %v2044_v54 = vpop.f32.mrb[5].mxu1  ;;  %v1321_v49 = vsel %vm4393_vm8, 0, %v1319_v34  ;;  %v1527_v34 = vand.u32 2147483647, %v4446_v17 }
 0x2e2   : > { %v2045_v24 = vadd.f32 %v4373_v42, %v2044_v54  ;;  %v1706_v22 = vor.u32 %v1705_v19, %v1704_v21  ;;  %v1709_v26 = vshll.u32 %v1708_v6, 23  ;;  %v1325_v11 = vadd.s32 3, %v1321_v49 }
 0x2e3   : > { %v2064_v25 = vmul.f32 %v2050_v37, %v1231_v35  ;;  %v2945_v37 = vpop.eup %2944 }
 0x2e4   : > { %v2063_v8 = vmul.f32 %v2045_v24, %v1127_v46  ;;  %v1710_v5 = vor.u32 4788187, %v1709_v26  ;;  %v1713_v44 = vcvt.s32.f32 %v1706_v22  ;;  %v2947_v54 = vpop.eup %2946  ;;  %v1724_v24 = vadd.s32 3, %v1720_v56 }
 0x2e5   : > { %v2949_v28 = vpop.eup %2948  ;;  %v1326_v23 = vand.u32 3, %v1325_v11  ;;  %v1436_v0 = vxor.u32 2147483648, %v2945_v37  ;;  %v1433_v13 = vxor.u32 2147483648, %v2947_v54 }
 0x2e6   : > { %2659 = vmatprep.mubr.f32.mxu0 %v2063_v8  ;;  %v1711_v9 = vand.u32 2147483647, %v1710_v5  ;;  %v2951_v38 = vpop.eup %2950  ;;  %v1725_v46 = vand.u32 3, %v1724_v24  ;;  %v1430_v8 = vand.u32 3, %v1429_v41  ;;  %v1332_v45 = vxor.u32 2147483648, %v2949_v28 }
 0x2e7   : > { %2660 = vmatmul.mubr.f32.vlgmr.msra.gmra.mrb[8].mxu0 %v2064_v25  ;;  %vm1328_vm11 = vcmp.eq.s32.totalorder %v1326_v23, 0  ;;  %vm1331_vm12 = vcmp.eq.s32.totalorder %v1326_v23, 2  ;;  %v1329_v25 = vxor.u32 2147483648, %v2951_v38  ;;  %vm1327_vm3 = vcmp.lt.s32.totalorder %v1326_v23, 2 }
 0x2e8   : > { %v1714_v1 = vmul.f32 %v1713_v44, %v1711_v9  ;;  %vm1727_vm10 = vcmp.eq.s32.totalorder %v1725_v46, 0  ;;  %vm1730_vm13 = vcmp.eq.s32.totalorder %v1725_v46, 2  ;;  %vm1726_vm14 = vcmp.lt.s32.totalorder %v1725_v46, 2 }
 0x2e9   : > { %vm1432_vm15 = vcmp.eq.s32.totalorder %v1430_v8, 0  ;;  %vm1435_vm1 = vcmp.eq.s32.totalorder %v1430_v8, 2  ;;  %v1330_v53 = vsel %vm1328_vm11, %v2949_v28, %v1329_v25  ;;  %v1333_v57 = vsel %vm1331_vm12, %v1332_v45, %v2951_v38 }
 0x2ea   : > { %v1715_v33 = vxor.u32 2147483648, %v1714_v1  ;;  %vm1431_vm4 = vcmp.lt.s32.totalorder %v1430_v8, 2  ;;  %v1434_v6 = vsel %vm1432_vm15, %v2945_v37, %v1433_v13  ;;  %v1437_v52 = vsel %vm1435_vm1, %v1436_v0, %v2947_v54 }
 0x2eb   : > { %v1334_v50 = vsel %vm1327_vm3, %v1330_v53, %v1333_v57  ;;  %v1438_v31 = vsel %vm1431_vm4, %v1434_v6, %v1437_v52  ;;  %v4462_v54 = vadd.f32 %v4033_v36, %v4285_v7  ;;  %v1534_v41 = vand.u32 8388607, %v1527_v34 }
 0x2ec   : > { %v1716_v30 = vsel %vm1633_vm0, %v1715_v33, %v1714_v1  ;;  %v1335_v43 = vsel %vm1324_vm5, nan, %v1334_v50  ;;  %v1439_v51 = vsel %vm1428_vm6, nan, %v1438_v31  ;;  %v1531_v1 = vshrl.u32 %v1530_v47, 23 }
 0x2ed   : > { %v1719_v61 = vsel %vm4409_vm9, %v4277_v32, %v1716_v30  ;;  %v4471_v7 = vadd.f32 %v4033_v36, %v4289_v2  ;;  %vm3258_vm6 = vmmov 0  }
 0x2ee   : > { %2952 = vcosq.f32 %v1719_v61  ;;  %v2480_v48 = vadd.s32 4294967169, %v1531_v1 }
 0x2ef   : > { %2954 = vsinq.f32 %v1719_v61 }
 0x2f0   : > { %v1537_v60 = vadd.s32 1, %v2480_v48 }
 0x2f2   : > { %vm1538_vm7 = vcmp.gt.s32.totalorder %v1537_v60, 0 }
 0x2f3   : > { %v1539_v3 = vsel %vm1538_vm7, %v1537_v60, 0 }
 0x2f4   : > { %v1541_v33 = vand.u32 31, %v1539_v3  ;;  %v1540_v30 = vshrl.u32 %v1539_v3, 5 }
 0x2f6   : > { %v1542_v15 = vsub.s32 32, %v1541_v33  ;;  %v1556_v61 = vshll.u32 %v3255_v20, %v1541_v33  ;;  %v1544_v4 = vshll.u32 %v3251_v10, %v1541_v33  ;;  %v1547_v49 = vshll.u32 %v3252_v14, %v1541_v33 }
 0x2f7   : > { %v1550_v11 = vshll.u32 %v3253_v16, %v1541_v33  ;;  %vm1562_vm8 = vcmp.lt.s32.totalorder %v1540_v30, 4  ;;  %vm1559_vm0 = vcmp.lt.s32.totalorder %v1540_v30, 1  ;;  %vm1561_vm9 = vcmp.lt.s32.totalorder %v1540_v30, 3 }
 0x2f8   : > { %v2953_v62 = vpop.eup %2952  ;;  %v1554_v55 = vshrl.u32 %v3255_v20, %v1542_v15  ;;  %v1557_v40 = vshrl.u32 %v3256_v27, %v1542_v15  ;;  %v1545_v59 = vshrl.u32 %v3252_v14, %v1542_v15  ;;  %v1548_v29 = vshrl.u32 %v3253_v16, %v1542_v15 }
 0x2f9   : > { %v2955_v35 = vpop.eup %2954  ;;  %v1731_v12 = vxor.u32 2147483648, %v2953_v62  ;;  %v1551_v56 = vshrl.u32 %v3254_v18, %v1542_v15  ;;  %v1543_v6 = vshrl.u32 %v3251_v10, %v1542_v15 }
 0x2fa   : > { %v1728_v63 = vxor.u32 2147483648, %v2955_v35  ;;  %v1558_v24 = vor.u32 %v1557_v40, %v1556_v61  ;;  %v1546_v28 = vor.u32 %v1545_v59, %v1544_v4  ;;  %v1549_v23 = vor.u32 %v1548_v29, %v1547_v49 }
 0x2fb   : > { %v1732_v21 = vsel %vm1730_vm13, %v1731_v12, %v2955_v35  ;;  %v1552_v38 = vor.u32 %v1551_v56, %v1550_v11  ;;  %v1535_v35 = vor.u32 8388608, %v1534_v41  ;;  %v1738_v12 = vand.u32 2139095040, %v4471_v7 }
 0x2fc   : > { %v1729_v58 = vsel %vm1727_vm10, %v2953_v62, %v1728_v63  ;;  %v1842_v62 = vand.u32 2139095040, %v4462_v54  ;;  %v1572_v8 = vsel %vm1562_vm8, %v1558_v24, 1326507024  ;;  %vm1560_vm10 = vcmp.lt.s32.totalorder %v1540_v30, 2 }
 0x2fd   : > { %v1733_v19 = vsel %vm1726_vm14, %v1729_v58, %v1732_v21  ;;  %v1567_v63 = vsel %vm1559_vm0, %v1546_v28, %v1549_v23  ;;  %v1571_v25 = vsel %vm1559_vm0, %v1549_v23, %v1552_v38  ;;  %v1575_v58 = vshll.u32 %v1535_v35, 8 }
 0x2fe   : > { %v4438_v22 = vsel %vm1723_vm2, nan, %v1733_v19  ;;  %v1843_v13 = vshrl.u32 %v1842_v62, 23  ;;  %v1739_v19 = vshrl.u32 %v1738_v12, 23  ;;  %v1564_v50 = vsel %vm1562_vm8, %v1552_v38, 2102212464 }
 0x2ff   : > { %v1735_v40 = vand.u32 2147483647, %v4471_v7 }
 0x300   : > { %v2492_v57 = vadd.s32 4294967169, %v1843_v13 }
 0x302   : > { %v1849_v31 = vadd.s32 1, %v2492_v57 }
 0x304   : > { %vm1850_vm11 = vcmp.gt.s32.totalorder %v1849_v31, 0 }
 0x30a   : > { %v2626_v26 = vpop.f32.mrb[6].mxu1 }
 0x30b   : > { %v2060_v32 = vadd.f32 %v2626_v26, %v4373_v42  ;;  %v2054_v5 = vpop.f32.mrb[7].mxu1 }
 0x30c   : > { %v2055_v44 = vadd.f32 %v4373_v42, %v2054_v5  ;;  %v1553_v42 = vshll.u32 %v3254_v18, %v1541_v33  ;;  %v1563_v5 = vsel %vm1559_vm0, %v1543_v6, %v1546_v28 }
 0x30d   : > { %v2066_v39 = vmul.f32 %v2060_v32, %v1439_v51  ;;  %v2488_v32 = vadd.s32 4294967169, %v1739_v19 }
 0x30e   : > { %v2065_v9 = vmul.f32 %v2055_v44, %v1335_v43  ;;  %v1555_v37 = vor.u32 %v1554_v55, %v1553_v42  ;;  %v1565_v44 = vsel %vm1561_vm9, %v1549_v23, %v1564_v50  ;;  %v1839_v55 = vand.u32 2147483647, %v4462_v54 }
 0x30f   : > { %v1566_v43 = vsel %vm1560_vm10, %v1563_v5, %v1565_v44 }
 0x310   : > { %2662 = vmatprep.mubr.f32.mxu0 %v2065_v9  ;;  %v1568_v46 = vsel %vm1562_vm8, %v1555_v37, 920167782  ;;  %v1573_v45 = vsel %vm1561_vm9, %v1555_v37, %v1572_v8  ;;  %v1745_v9 = vadd.s32 1, %v2488_v32  ;;  %v1582_v47 = vmul.u32 %v1575_v58, %v1566_v43 }
 0x311   : > { %2663 = vmatmul.mubr.f32.gmra.mrb[10].mxu0 %v2066_v39  ;;  %v1569_v0 = vsel %vm1561_vm9, %v1552_v38, %v1568_v46  ;;  %v1574_v53 = vsel %vm1560_vm10, %v1571_v25, %v1573_v45  ;;  %v1851_v39 = vsel %vm1850_vm11, %v1849_v31, 0  ;;  %v1846_v28 = vand.u32 8388607, %v1839_v55 }
 0x312   : > { %v1570_v21 = vsel %vm1560_vm10, %v1567_v63, %v1569_v0  ;;  %v4485_v52 = vmul.u32.u64.low %v1575_v58, %v1574_v53  ;;  %v4486_v26 = vmul.u32.u64.high %v1575_v58, %v1574_v53, %v4485_v52  ;;  %vm1746_vm13 = vcmp.gt.s32.totalorder %v1745_v9, 0 }
 0x313   : > { %v4480_v36 = vmul.u32.u64.low %v1575_v58, %v1570_v21  ;;  %v4481_v2 = vmul.u32.u64.high %v1575_v58, %v1570_v21, %v4480_v36  ;;  %v1853_v48 = vand.u32 31, %v1851_v39  ;;  %v1747_v3 = vsel %vm1746_vm13, %v1745_v9, 0 }
 0x314   : > { %v1749_v15 = vand.u32 31, %v1747_v3  ;;  %v4509_v11 = vshrl.u32 %v1851_v39, 5  ;;  %v1742_v38 = vand.u32 8388607, %v1735_v40  ;;  %v4534_v13 = vshrl.u32 %v1747_v3, 5 }
 0x315   : > { %v1585_v51 = vadd.s32 1, %v4481_v2  ;;  %vm1584_vm12 = vc.u32 %v4486_v26, %v4480_v36  ;;  %v4496_v33 = vsub.s32 32, %v1853_v48  ;;  %v1856_v30 = vshll.u32 %v3251_v10, %v1853_v48 }
 0x316   : > { %v1859_v61 = vshll.u32 %v3252_v14, %v1853_v48  ;;  %v1865_v59 = vshll.u32 %v3254_v18, %v1853_v48  ;;  %v1868_v56 = vshll.u32 %v3255_v20, %v1853_v48  ;;  %v4514_v41 = vsub.s32 32, %v1749_v15 }
 0x317   : > { %v1586_v1 = vsel %vm1584_vm12, %v1585_v51, %v4481_v2  ;;  %v1857_v4 = vshrl.u32 %v3252_v14, %v4496_v33  ;;  %v1860_v49 = vshrl.u32 %v3253_v16, %v4496_v33  ;;  %v1866_v29 = vshrl.u32 %v3255_v20, %v4496_v33 }
 0x318   : > { %v1587_v60 = vadd.s32 %v1586_v1, %v1582_v47  ;;  %v1869_v37 = vshrl.u32 %v3256_v27, %v4496_v33  ;;  %v1862_v23 = vshll.u32 %v3253_v16, %v1853_v48  ;;  %v1863_v35 = vshrl.u32 %v3254_v18, %v4496_v33 }
 0x319   : > { %v4523_v46 = vor.u32 %v1857_v4, %v1856_v30  ;;  %v4525_v62 = vor.u32 %v1860_v49, %v1859_v61  ;;  %v1867_v8 = vor.u32 %v1866_v29, %v1865_v59  ;;  %vm1871_vm14 = vcmp.lt.s32.totalorder %v4509_v11, 1 }
 0x31a   : > { %v1588_v42 = vadd.s32 536870912, %v1587_v60  ;;  %v1870_v63 = vor.u32 %v1869_v37, %v1868_v56  ;;  %v1761_v0 = vshll.u32 %v3254_v18, %v1749_v15  ;;  %v1762_v25 = vshrl.u32 %v3255_v20, %v4514_v41 }
 0x31b   : > { %v1764_v58 = vshll.u32 %v3255_v20, %v1749_v15  ;;  %v1765_v12 = vshrl.u32 %v3256_v27, %v4514_v41  ;;  %vm1874_vm15 = vcmp.lt.s32.totalorder %v4509_v11, 4  ;;  %v1752_v21 = vshll.u32 %v3251_v10, %v1749_v15 }
 0x31c   : > { %v4516_v24 = vshrl.u32 %v1588_v42, 30  ;;  %v1755_v53 = vshll.u32 %v3252_v14, %v1749_v15  ;;  %v1758_v57 = vshll.u32 %v3253_v16, %v1749_v15  ;;  %v1753_v2 = vshrl.u32 %v3252_v14, %v4514_v41 }
 0x31d   : > { %v1756_v19 = vshrl.u32 %v3253_v16, %v4514_v41  ;;  %v1759_v20 = vshrl.u32 %v3254_v18, %v4514_v41  ;;  %v1864_v6 = vor.u32 %v1863_v35, %v1862_v23  ;;  %vm1873_vm1 = vcmp.lt.s32.totalorder %v4509_v11, 3 }
 0x31e   : > { %v1590_v45 = vshll.u32 %v4516_v24, 30  ;;  %v1763_v27 = vor.u32 %v1762_v25, %v1761_v0  ;;  %v3257_v52 = vmov 0.0|0.0   ;;  %v1880_v31 = vsel %vm1874_vm15, %v1867_v8, 920167782  ;;  %v2182_v0 = vld [vmem:[#allocation2] sm:$0x1] }
 0x31f   : > { %2740 = vmatprep.subr.bf16.mxu1 %v3257_v52  ;;  %v1766_v32 = vor.u32 %v1765_v12, %v1764_v58  ;;  %vm1770_vm2 = vcmp.lt.s32.totalorder %v4534_v13, 4  ;;  %v1847_v14 = vor.u32 8388608, %v1846_v28  ;;  %vm1872_vm3 = vcmp.lt.s32.totalorder %v4509_v11, 2 }
 0x320   : > { %v4551_v50 = vsub.s32 %v1587_v60, %v1590_v45  ;;  %v1879_v16 = vsel %vm1871_vm14, %v4523_v46, %v4525_v62  ;;  %v1743_v18 = vor.u32 8388608, %v1742_v38  ;;  %v1884_v5 = vsel %vm1874_vm15, %v1870_v63, 1326507024 }
 0x321   : > { %v1754_v44 = vor.u32 %v1753_v2, %v1752_v21  ;;  %v1757_v43 = vor.u32 %v1756_v19, %v1755_v53  ;;  %v1760_v51 = vor.u32 %v1759_v20, %v1758_v57  ;;  %v1881_v9 = vsel %vm1873_vm1, %v1864_v6, %v1880_v31 }
 0x322   : > { %vm1767_vm4 = vcmp.lt.s32.totalorder %v4534_v13, 1  ;;  %vm1769_vm5 = vcmp.lt.s32.totalorder %v4534_v13, 3  ;;  %v1776_v39 = vsel %vm1770_vm2, %v1763_v27, 920167782  ;;  %v1593_v47 = vsub.s32 0, %v4551_v50 }
 0x323   : > { %v1780_v1 = vsel %vm1770_vm2, %v1766_v32, 1326507024  ;;  %v1883_v48 = vsel %vm1871_vm14, %v4525_v62, %v1864_v6  ;;  %v1885_v60 = vsel %vm1873_vm1, %v1867_v8, %v1884_v5  ;;  %v3259_v3 = vmov 0.0  }
 0x324   : > { %2673 = vmatprep.mubr.msk.f32.mxu1 %vm3258_vm6, %v3259_v3  ;;  %v1887_v15 = vshll.u32 %v1847_v14, 8  ;;  %vm1768_vm7 = vcmp.lt.s32.totalorder %v4534_v13, 2  ;;  %v1775_v42 = vsel %vm1767_vm4, %v1754_v44, %v1757_v43  ;;  %v1777_v30 = vsel %vm1769_vm5, %v1760_v51, %v1776_v39 }
 0x325   : > { %v1882_v61 = vsel %vm1872_vm3, %v1879_v16, %v1881_v9  ;;  %v1779_v4 = vsel %vm1767_vm4, %v1757_v43, %v1760_v51  ;;  %v1781_v49 = vsel %vm1769_vm5, %v1763_v27, %v1780_v1  ;;  %v2481_v59 = vmin.u32 %v1593_v47, %v4551_v50 }
 0x326   : > { %v1886_v29 = vsel %vm1872_vm3, %v1883_v48, %v1885_v60  ;;  %v1783_v56 = vshll.u32 %v1743_v18, 8  ;;  %v1778_v37 = vsel %vm1768_vm7, %v1775_v42, %v1777_v30  ;;  %v1782_v38 = vsel %vm1768_vm7, %v1779_v4, %v1781_v49 }
 0x327   : > { %v4593_v28 = vmul.u32.u64.low %v1887_v15, %v1882_v61  ;;  %v4594_v23 = vmul.u32.u64.high %v1887_v15, %v1882_v61, %v4593_v28  ;;  %v1855_v35 = vshrl.u32 %v3251_v10, %v4496_v33  ;;  %v1595_v25 = vclz %v2481_v59 }
 0x328   : > { %v4601_v8 = vmul.u32.u64.low %v1887_v15, %v1886_v29  ;;  %v4602_v63 = vmul.u32.u64.high %v1887_v15, %v1886_v29, %v4601_v8  ;;  %v1876_v45 = vsel %vm1874_vm15, %v1864_v6, 2102212464  ;;  %v3260_v21 = vmov 0  }
 0x329   : > { %v4606_v58 = vmul.u32.u64.low %v1783_v56, %v1778_v37  ;;  %v4607_v12 = vmul.u32.u64.high %v1783_v56, %v1778_v37, %v4606_v58  ;;  %2919 = vset.pattern.permute.xlu0 %v3260_v21  ;;  %v1751_v53 = vshrl.u32 %v3251_v10, %v4514_v41  ;;  %v1772_v33 = vsel %vm1770_vm2, %v1760_v51, 2102212464 }
 0x32a   : > { %v4612_v57 = vmul.u32.u64.low %v1783_v56, %v1782_v38  ;;  %v4613_v2 = vmul.u32.u64.high %v1783_v56, %v1782_v38, %v4612_v57  ;;  %2185 = vperm.xlu0 %2919, %v2182_v0   ;;  %v1875_v19 = vsel %vm1871_vm14, %v1855_v35, %v4523_v46  ;;  %v1877_v20 = vsel %vm1873_vm1, %v4525_v62, %v1876_v45 }
 0x32b   : > { %v2482_v6 = vadd.s32 4294967294, %v1595_v25  ;;  %v1771_v27 = vsel %vm1767_vm4, %v1751_v53, %v1754_v44  ;;  %v1773_v10 = vsel %vm1769_vm5, %v1757_v43, %v1772_v33  ;;  %v1878_v41 = vsel %vm1872_vm3, %v1875_v19, %v1877_v20 }
 0x32c   : > { %v1897_v31 = vadd.s32 1, %v4594_v23  ;;  %vm1896_vm8 = vc.u32 %v4602_v63, %v4593_v28  ;;  %v1774_v46 = vsel %vm1768_vm7, %v1771_v27, %v1773_v10  ;;  %v1793_v62 = vadd.s32 1, %v4607_v12 }
 0x32d   : > { %vm2483_vm0 = vcmp.lt.s32.totalorder %v2482_v6, 0  ;;  %v1894_v32 = vmul.u32 %v1887_v15, %v1878_v41  ;;  %vm1792_vm9 = vc.u32 %v4613_v2, %v4606_v58  ;;  %v1790_v11 = vmul.u32 %v1783_v56, %v1774_v46 }
 0x32e   : > { %v1898_v14 = vsel %vm1896_vm8, %v1897_v31, %v4594_v23  ;;  %v1598_v16 = vsel %vm2483_vm0, 0, %v2482_v6  ;;  %v1794_v18 = vsel %vm1792_vm9, %v1793_v62, %v4607_v12  ;;  %v1583_v13 = vadd.s32 %v4480_v36, %v4486_v26 }
 0x32f   : > { %v1899_v5 = vadd.s32 %v1898_v14, %v1894_v32  ;;  %v1603_v44 = vsub.s32 4294967266, %v1598_v16  ;;  %v1795_v43 = vadd.s32 %v1794_v18, %v1790_v11  ;;  %v1599_v9 = vsub.s32 32, %v1598_v16 }
 0x330   : > { %v1600_v48 = vshll.u32 %v4551_v50, %v1598_v16  ;;  %vm1529_vm10 = vcmp.lt.s32.totalorder %v4446_v17, 0  ;;  %vm4651_vm11 = vcmp.le.f32.partialorder %v1527_v34, 0.7853982  ;;  %v1613_v21 = vsub.s32 4, %v4516_v24 }
 0x331   : > { %v1900_v51 = vadd.s32 536870912, %v1899_v5  ;;  %v1604_v39 = vadd.s32 127, %v1603_v44  ;;  %v1796_v47 = vadd.s32 536870912, %v1795_v43  ;;  %v1601_v60 = vshrl.u32 %v1583_v13, %v1599_v9 }
 0x332   : > { %v1614_v57 = vsel %vm1529_vm10, %v1613_v21, %v4516_v24  ;;  %v1895_v31 = vadd.s32 %v4593_v28, %v4602_v63  ;;  %v1791_v24 = vadd.s32 %v4606_v58, %v4613_v2  ;;  %vm1619_vm2 = vweird.f32 %v4446_v17 }
 0x333   : > { %v4641_v1 = vshrl.u32 %v1900_v51, 30  ;;  %v1605_v3 = vshll.u32 %v1604_v39, 23  ;;  %v4644_v15 = vshrl.u32 %v1796_v47, 30  ;;  %v1602_v30 = vor.u32 %v1601_v60, %v1600_v48  ;;  %v4667_v48 = vld [vmem:[%s3593_s11 + $0x2] ss:$0 sm:$0xff] }
 0x334   : > { %v1616_v33 = vsel %vm4651_vm11, 0, %v1614_v57  ;;  %vm1841_vm3 = vcmp.lt.s32.totalorder %v4462_v54, 0  ;;  %vm1737_vm4 = vcmp.lt.s32.totalorder %v4471_v7, 0  ;;  %vm4678_vm5 = vcmp.le.f32.partialorder %v1839_v55, 0.7853982 }
 0x335   : > { %v1902_v42 = vshll.u32 %v4641_v1, 30  ;;  %v1606_v61 = vor.u32 4788187, %v1605_v3  ;;  %v1798_v4 = vshll.u32 %v4644_v15, 30  ;;  %v1609_v36 = vcvt.s32.f32 %v1602_v30 }
 0x336   : > { %v1620_v6 = vadd.s32 3, %v1616_v33  ;;  %vm1736_vm6 = vcmp.le.f32.partialorder %v1735_v40, 0.7853982 }
 0x337   : > { %v1903_v49 = vsub.s32 %v1899_v5, %v1902_v42  ;;  %v1607_v59 = vand.u32 2147483647, %v1606_v61  ;;  %v1799_v26 = vsub.s32 %v1795_v43, %v1798_v4 }
 0x338   : > { %v1621_v32 = vand.u32 3, %v1620_v6 }
 0x339   : > { %v1905_v29 = vsub.s32 0, %v1903_v49  ;;  %v1610_v56 = vmul.f32 %v1609_v36, %v1607_v59  ;;  %v1801_v37 = vsub.s32 0, %v1799_v26 }
 0x33a   : > { %vm1623_vm14 = vcmp.eq.s32.totalorder %v1621_v32, 0  ;;  %vm1626_vm15 = vcmp.eq.s32.totalorder %v1621_v32, 2  ;;  %vm1622_vm1 = vcmp.lt.s32.totalorder %v1621_v32, 2 }
 0x33b   : > { %v2493_v23 = vmin.u32 %v1905_v29, %v1903_v49  ;;  %v1611_v38 = vxor.u32 2147483648, %v1610_v56  ;;  %v2489_v50 = vmin.u32 %v1801_v37, %v1799_v26 }
 0x33d   : > { %v1907_v35 = vclz %v2493_v23  ;;  %v1612_v0 = vsel %vm1529_vm10, %v1611_v38, %v1610_v56  ;;  %v1803_v25 = vclz %v2489_v50 }
 0x33e   : > { %v1615_v45 = vsel %vm4651_vm11, %v4446_v17, %v1612_v0  ;;  %v1925_v0 = vsub.s32 4, %v4641_v1 }
 0x33f   : > { %v2494_v12 = vadd.s32 4294967294, %v1907_v35  ;;  %v2490_v53 = vadd.s32 4294967294, %v1803_v25  ;;  %2956 = vcosq.f32 %v1615_v45 }
 0x340   : > { %2958 = vsinq.f32 %v1615_v45  ;;  %v1821_v45 = vsub.s32 4, %v4644_v15  ;;  %v1926_v55 = vsel %vm1841_vm3, %v1925_v0, %v4641_v1 }
 0x341   : > { %vm2495_vm12 = vcmp.lt.s32.totalorder %v2494_v12, 0  ;;  %vm2491_vm13 = vcmp.lt.s32.totalorder %v2490_v53, 0  ;;  %v1928_v40 = vsel %vm4678_vm5, 0, %v1926_v55 }
 0x342   : > { %v1910_v34 = vsel %vm2495_vm12, 0, %v2494_v12  ;;  %v1806_v19 = vsel %vm2491_vm13, 0, %v2490_v53  ;;  %v1822_v12 = vsel %vm1737_vm4, %v1821_v45, %v4644_v15  ;;  %v1932_v53 = vadd.s32 3, %v1928_v40 }
 0x343   : > { %v1915_v20 = vsub.s32 4294967266, %v1910_v34  ;;  %v1811_v27 = vsub.s32 4294967266, %v1806_v19  ;;  %v1911_v46 = vsub.s32 32, %v1910_v34  ;;  %v1807_v14 = vsub.s32 32, %v1806_v19 }
 0x344   : > { %v1912_v11 = vshll.u32 %v1903_v49, %v1910_v34  ;;  %v1808_v51 = vshll.u32 %v1799_v26, %v1806_v19  ;;  %v1824_v21 = vsel %vm1736_vm6, 0, %v1822_v12  ;;  %vm1931_vm12 = vweird.f32 %v4462_v54 }
 0x345   : > { %v1916_v62 = vadd.s32 127, %v1915_v20  ;;  %v1812_v16 = vadd.s32 127, %v1811_v27  ;;  %v1913_v44 = vshrl.u32 %v1895_v31, %v1911_v46  ;;  %v1809_v13 = vshrl.u32 %v1791_v24, %v1807_v14 }
 0x346   : > { %v1828_v57 = vadd.s32 3, %v1824_v21  ;;  %v1933_v20 = vand.u32 3, %v1932_v53  ;;  %vm1827_vm13 = vweird.f32 %v4471_v7 }
 0x347   : > { %v1917_v43 = vshll.u32 %v1916_v62, 23  ;;  %v1813_v9 = vshll.u32 %v1812_v16, 23  ;;  %v1914_v39 = vor.u32 %v1913_v44, %v1912_v11  ;;  %v1810_v58 = vor.u32 %v1809_v13, %v1808_v51 }
 0x348   : > { %v1829_v27 = vand.u32 3, %v1828_v57  ;;  %vm1935_vm7 = vcmp.eq.s32.totalorder %v1933_v20, 0  ;;  %vm1938_vm8 = vcmp.eq.s32.totalorder %v1933_v20, 2  ;;  %vm1934_vm10 = vcmp.lt.s32.totalorder %v1933_v20, 2 }
 0x349   : > { %v2957_v10 = vpop.eup %2956  ;;  %v1918_v47 = vor.u32 4788187, %v1917_v43  ;;  %v1814_v2 = vor.u32 4788187, %v1813_v9  ;;  %v1921_v4 = vcvt.s32.f32 %v1914_v39  ;;  %v1817_v29 = vcvt.s32.f32 %v1810_v58 }
 0x34a   : > { %v2959_v41 = vpop.eup %2958  ;;  %v1627_v5 = vxor.u32 2147483648, %v2957_v10  ;;  %vm1831_vm0 = vcmp.eq.s32.totalorder %v1829_v27, 0  ;;  %vm1834_vm9 = vcmp.eq.s32.totalorder %v1829_v27, 2  ;;  %vm1830_vm11 = vcmp.lt.s32.totalorder %v1829_v27, 2 }
 0x34b   : > { %v1624_v18 = vxor.u32 2147483648, %v2959_v41  ;;  %v1919_v61 = vand.u32 2147483647, %v1918_v47  ;;  %v1815_v26 = vand.u32 2147483647, %v1814_v2 }
 0x34c   : > { %v1628_v63 = vsel %vm1626_vm15, %v1627_v5, %v2959_v41 }
 0x34d   : > { %v1625_v28 = vsel %vm1623_vm14, %v2957_v10, %v1624_v18  ;;  %v1922_v37 = vmul.f32 %v1921_v4, %v1919_v61  ;;  %v1818_v38 = vmul.f32 %v1817_v29, %v1815_v26  ;;  %vm2262_vm14 = vcmask 253952  }
 0x34e   : > { %v1629_v3 = vsel %vm1622_vm1, %v1625_v28, %v1628_v63  ;;  %v2181_v28 = vld [vmem:[#allocation12] sm:$0x1] }
 0x34f   : > { %v1630_v36 = vsel %vm1619_vm2, nan, %v1629_v3  ;;  %v1923_v17 = vxor.u32 2147483648, %v1922_v37  ;;  %v1819_v50 = vxor.u32 2147483648, %v1818_v38 }
 0x351   : > { %v1924_v35 = vsel %vm1841_vm3, %v1923_v17, %v1922_v37  ;;  %v1820_v8 = vsel %vm1737_vm4, %v1819_v50, %v1818_v38 }
 0x352   : > { %v1823_v25 = vsel %vm1736_vm6, %v4471_v7, %v1820_v8 }
 0x3a9   : > { %v2186_v39 = vpop.permute.xlu0 %2185 }
 0x3ba   : > { %v2661_v60 = vpop.f32.mrb[8].mxu0 }
 0x3bb   : > { %v2164_v42 = vadd.f32 %v2661_v60, %v4667_v48  ;;  %v2158_v30 = vpop.f32.mrb[9].mxu0 }
 0x3bc   : > { %v2159_v49 = vadd.f32 %v4667_v48, %v2158_v30 }
 0x3bd   : > { %v2178_v59 = vmul.f32 %v2164_v42, %v4438_v22 }
 0x3be   : > { %v2177_v56 = vmul.f32 %v2159_v49, %v1630_v36 }
 0x3c0   : > { %v2741_v23 = vpack.c.bf16 %v2178_v59, %v2177_v56 }
 0x3c2   : > { %2742 = vmatpush3.bf16.xpose.msra.mxu1 %v2741_v23 }
 0x3c3   : > { %2743 = vmatprep.subr.bf16.mxu1 %v3257_v52  ;;  %v1927_v52 = vsel %vm4678_vm5, %v4462_v54, %v1924_v35  ;;  %v2188_v54 = vlaneseq }
 0x3c4   : > { %2960 = vcosq.f32 %v1927_v52 }
 0x3c5   : > { %2962 = vsinq.f32 %v1927_v52  ;;  %v2189_v63 = vshrl.u32 %v2188_v54, 7 }
 0x3c6   : > { %2964 = vcosq.f32 %v1823_v25 }
 0x3c7   : > { %2966 = vsinq.f32 %v1823_v25  ;;  %v2190_v7 = vsub.s32 0, %v2189_v63 }
 0x3c9   : > { %v2191_v47 = vrot.slane %v2186_v39, %v2190_v7 }
 0x3ce   : > { %v2961_v34 = vpop.eup %2960 }
 0x3cf   : > { %v2963_v33 = vpop.eup %2962  ;;  %v1939_v41 = vxor.u32 2147483648, %v2961_v34 }
 0x3d0   : > { %v2965_v19 = vpop.eup %2964  ;;  %v1936_v10 = vxor.u32 2147483648, %v2963_v33 }
 0x3d1   : > { %v2967_v6 = vpop.eup %2966  ;;  %v1835_v31 = vxor.u32 2147483648, %v2965_v19  ;;  %v1940_v46 = vsel %vm1938_vm8, %v1939_v41, %v2963_v33 }
 0x3d2   : > { %v1832_v1 = vxor.u32 2147483648, %v2967_v6  ;;  %v1937_v15 = vsel %vm1935_vm7, %v2961_v34, %v1936_v10 }
 0x3d3   : > { %v1836_v32 = vsel %vm1834_vm9, %v1835_v31, %v2967_v6  ;;  %v1941_v24 = vsel %vm1934_vm10, %v1937_v15, %v1940_v46 }
 0x3d4   : > { %v1833_v62 = vsel %vm1831_vm0, %v2965_v19, %v1832_v1  ;;  %v1942_v5 = vsel %vm1931_vm12, nan, %v1941_v24 }
 0x3d5   : > { %v1837_v16 = vsel %vm1830_vm11, %v1833_v62, %v1836_v32 }
 0x3d6   : > { %v1838_v51 = vsel %vm1827_vm13, nan, %v1837_v16 }
 0x3e4   : > { %v2664_v14 = vpop.f32.mrb[10].mxu0 }
 0x3e5   : > { %v2174_v11 = vadd.f32 %v2664_v14, %v4667_v48  ;;  %v2168_v18 = vpop.f32.mrb[11].mxu0 }
 0x3e6   : > { %v2169_v44 = vadd.f32 %v4667_v48, %v2168_v18 }
 0x3e7   : > { %v2180_v43 = vmul.f32 %v2174_v11, %v1942_v5 }
 0x3e8   : > { %v2179_v13 = vmul.f32 %v2169_v44, %v1838_v51 }
 0x3ea   : > { %v2744_v9 = vpack.c.bf16 %v2180_v43, %v2179_v13 }
 0x3ec   : > { %2745 = vmatpush3.bf16.xpose.msra.mxu1 %v2744_v9 }
 0x3f3   : > { %2674 = vmatmul.mubr.f32.vlgmr.msra.gmra.mrb[8].mxu1 %v2181_v28 }
 0x4c6   : > { %v2258_v58 = vpop.f32.mrb[8].mxu1 }
 0x4c7   : > { %v2259_v48 = vadd.f32 %v2258_v58, %v2191_v47  ;;  %v2675_v2 = vpop.f32.mrb[9].mxu1 }
 0x4c9   : > { %2263 = vst.msk [vmem:[%s409_s10] sm:$0x1] %vm2262_vm14, %v2259_v48 }
 0x4ca   : > { %3154 = shalt.err (!%p3151_p6)
}
 0x4cb   : > { %s3155_s4 = scalar_lea.hbm %s4703_s24, 16  ;;  %s3159_s18 = scalar_lea.hbm %s4759_s7, 32 }
 0x4cc   : > { %p3156_p9 = scmp.ne.s32.totalorder %s4703_s24, %s3155_s4  ;;  %p3160_p2 = scmp.lt.u32.totalorder %s4703_s24, %s4759_s7 }
 0x4cd   : > { %p3161_p13 = scmp.lt.u32.totalorder %s3159_s18, %s3155_s4  ;;  %p3163_p1 = scmp.lt.u32.totalorder %s3155_s4, %s4703_s24 }
 0x4ce   : > { %p3157_p7 = pnand %p3156_p9, %p3480_p5 }
 0x4cf   : > { %p3162_p4 = por %p3161_p13, %p3160_p2 }
 0x4d0   : > { %p3158_p0 = pneg %p3157_p7 }
 0x4d1   : > { %p3164_p8 = por %p3163_p1, %p3162_p4 }
 0x4d3   : > { %p3165_p10 = pnand %p3164_p8, %p3158_p0 }
 0x4d5   : > { %3168 = shalt.err (!%p3165_p10)
}
 0x4d6   : > { %2817 = dma.vmem_to_hbm [thread:$0]  (%p3480_p5), %s4705_s13, 16, %s4703_s24, %s2265_s1  }
 0x4d7 PF: > { %s4814_s0 = sld [smem:[#allocation21_spill]]  ;;  %s4815_s2 = sld [smem:[#allocation22_spill]] }
 0x4d8   : > { %p4817_p11 = scmp.ge.s32.totalorder %s3239_s6, 2 }
 0x4dd   : > { %s2290_s12 = sand.u32 1, %s4814_s0   ;;  %p4816_p3 = scmp.ne.s32.totalorder %s4815_s2, 0 }
 0x4de   : > { %s2291_s11 = scalar_lea.sflag [#allocation5], %s2290_s12 }
 0x4df   : > { %p2840_p12 = pnand %p4817_p11, %p4816_p3 }
 0x4e1   : > { %3214 = dma.done.wait (!%p2840_p12), %s2291_s11, 16  }
 0x4e2   : > { %3216 = vsyncadd (!%p2840_p12), %s2291_s11, 4294967280  ;;  %s30_s6 = sadd.s32 1, %s3239_s6   ;;  %s4818_s26 = smov %s3223_s27 }
 0x4e3   : > { %p27_p6 = scmp.ge.s32.totalorder %s30_s6, 4   ;;  %s4819_s27 = smov %s3227_s28 }
 0x4e4   : > { %s4820_s28 = smov %s3492_s16  ;;  %s4821_s29 = smov %s3235_s30 }
 0x4e5   : > { %s4822_s30 = smov %s4824_s25  ;;  %29 = sbr.rel (!%p27_p6) target bundleno = 15 (0xf), region = 127 }
 0x4ec   :  { %2295 = vsyncpa [#allocation4], 1 }
 0x4ed   :  { %2297 = vsyncpa [#allocation4 + $0x1], 1 }
 0x4ee   :  { %2298 = vsyncpa [#allocation7], 1 }
 0x4ef   :  { %2299 = vsyncpa [#allocation10], 1 }
 0x4f0   :  { %2301 = vsyncpa [#allocation10 + $0x1], 1 }
 0x4f1   :  { %2302 = vsyncpa [#allocation13], 1 }
 0x4f2   :  { %2303 = vsyncpa [#allocation5], 1 }
 0x4f3   :  { %2305 = vsyncpa [#allocation5 + $0x1], 1 }

</bundles_post_ra>
